<compile_context>
chip_gen: v6e
topology: v6e:2x2x1
jax: 0.10.0
libtpu: 0.0.40
codegen_flags: <defaults>
</compile_context>

<pallas_src>
import functools

import jax
import jax.numpy as jnp
from jax.experimental import pallas as pl
from jax.experimental.pallas import tpu as pltpu

LN_EPS = 1e-5
_INV_SQRT2 = 0.7071067811865476
_SQRT_2_OVER_PI = 0.7978845608028654
_LANE = 128
_SUBLANE = 8


def _round_up(x, m):
    return (x + m - 1) // m * m


def _cdiv(a, b):
    return -(-a // b)


# ----------------------------- kernel helpers --------------------------------

def _layernorm_masked(h, w, b, mask, inv_n):
    # LayerNorm over the TRUE feature width on lane-padded data.
    # Two-pass (x - mu)^2 variance with an explicit lane mask: padded lanes of
    # h are zero (so sum*inv_n is the true mean), and the masked diff keeps the
    # variance and the output's padded lanes exact.  Matches torch.nn.LayerNorm.
    mu = jnp.sum(h, axis=-1, keepdims=True) * inv_n
    d = jnp.where(mask, h - mu, 0.0)
    var = jnp.sum(d * d, axis=-1, keepdims=True) * inv_n
    return d * jax.lax.rsqrt(var + LN_EPS) * w + b


def _gelu_tanh(h):
    # tanh-approximate GELU: runs on the (otherwise idle) EUP slot instead of a
    # multi-op VALU erf polynomial.  GELU(0)=0 so padded lanes stay zero.
    return 0.5 * h * (1.0 + jnp.tanh(_SQRT_2_OVER_PI * (h + 0.044715 * h * h * h)))


def _gelu_erf(h):
    # Exact erf formulation (torch.nn.GELU() default) -- used by the reference.
    return 0.5 * h * (1.0 + jax.lax.erf(h * _INV_SQRT2))


def _mixer_kernel(x_ref,
                  ln1_w, ln1_b, w1, b1, w2, b2,
                  ln2_w, ln2_b, w3, b3, w4, b4,
                  lnf_w, lnf_b,
                  o_ref, x_sc, *, inv_d, d_true):
    layer = pl.program_id(1)

    @pl.when(layer == 0)
    def _():
        x_sc[...] = x_ref[...].astype(jnp.float32)

    x = x_sc[...]
    dp = x.shape[-1]
    mask = jax.lax.broadcasted_iota(jnp.int32, (1, dp), 1) < d_true

    def _mlp(h, w_a_ref, b_a_ref, w_b_ref, b_b_ref):
        wa = w_a_ref[...]
        wb = w_b_ref[...]
        # Cast dot inputs to the (bf16) weight dtype; accumulate in f32 on MXU.
        h = jnp.dot(h.astype(wa.dtype), wa,
                    preferred_element_type=jnp.float32) + b_a_ref[...]
        h = _gelu_tanh(h)
        h = jnp.dot(h.astype(wb.dtype), wb,
                    preferred_element_type=jnp.float32) + b_b_ref[...]
        return h

    # token_mix: LN -> Linear(D,T) -> GELU -> Linear(T,D), residual.
    # (Per the PyTorch spec it acts on the d_model axis -- no seq transpose.)
    x = x + _mlp(_layernorm_masked(x, ln1_w[...], ln1_b[...], mask, inv_d),
                 w1, b1, w2, b2)
    # channel_mix: LN -> Linear(D,C) -> GELU -> Linear(C,D), residual.
    x = x + _mlp(_layernorm_masked(x, ln2_w[...], ln2_b[...], mask, inv_d),
                 w3, b3, w4, b4)

    x_sc[...] = x

    @pl.when(layer == pl.num_programs(1) - 1)
    def _():
        o_ref[...] = _layernorm_masked(
            x, lnf_w[...], lnf_b[...], mask, inv_d).astype(o_ref.dtype)


# ----------------------------- params ----------------------------------------

def init_params(key, d_model, depth, tokens_mlp_dim, channels_mlp_dim,
                dtype=jnp.float32):
    """Deterministic synthetic parameters (per-layer tensors stacked on axis 0)."""
    ks = jax.random.split(key, 10)
    n = lambda k, shape, s=0.02: (s * jax.random.normal(k, shape)).astype(dtype)
    D, T, C, L = d_model, tokens_mlp_dim, channels_mlp_dim, depth
    return {
        "ln1_w": jnp.ones((L, 1, D), dtype), "ln1_b": jnp.zeros((L, 1, D), dtype),
        "w1": n(ks[0], (L, D, T)), "b1": n(ks[1], (L, 1, T)),
        "w2": n(ks[2], (L, T, D)), "b2": n(ks[3], (L, 1, D)),
        "ln2_w": jnp.ones((L, 1, D), dtype), "ln2_b": jnp.zeros((L, 1, D), dtype),
        "w3": n(ks[4], (L, D, C)), "b3": n(ks[5], (L, 1, C)),
        "w4": n(ks[6], (L, C, D)), "b4": n(ks[7], (L, 1, D)),
        "lnf_w": jnp.ones((1, D), dtype), "lnf_b": jnp.zeros((1, D), dtype),
    }


def prepare_params(params, weight_dtype=jnp.bfloat16):
    """Pad all feature dims to multiples of 128 and cast matmul weights to bf16.

    Padding is with zeros, which (together with the masked LayerNorm in the
    kernel) keeps the padded lanes identically zero through the whole stack.
    Call once; the returned dict is what `mlp_mixer_forward` consumes.
    """
    L, D, T = params["w1"].shape
    C = params["w3"].shape[-1]
    Dp, Tp, Cp = _round_up(D, _LANE), _round_up(T, _LANE), _round_up(C, _LANE)
    f32 = jnp.float32

    def pad_to(a, shape):
        return jnp.pad(a, [(0, t - s) for s, t in zip(a.shape, shape)])

    return {
        "ln1_w": pad_to(params["ln1_w"], (L, 1, Dp)).astype(f32),
        "ln1_b": pad_to(params["ln1_b"], (L, 1, Dp)).astype(f32),
        "w1": pad_to(params["w1"], (L, Dp, Tp)).astype(weight_dtype),
        "b1": pad_to(params["b1"], (L, 1, Tp)).astype(f32),
        "w2": pad_to(params["w2"], (L, Tp, Dp)).astype(weight_dtype),
        "b2": pad_to(params["b2"], (L, 1, Dp)).astype(f32),
        "ln2_w": pad_to(params["ln2_w"], (L, 1, Dp)).astype(f32),
        "ln2_b": pad_to(params["ln2_b"], (L, 1, Dp)).astype(f32),
        "w3": pad_to(params["w3"], (L, Dp, Cp)).astype(weight_dtype),
        "b3": pad_to(params["b3"], (L, 1, Cp)).astype(f32),
        "w4": pad_to(params["w4"], (L, Cp, Dp)).astype(weight_dtype),
        "b4": pad_to(params["b4"], (L, 1, Dp)).astype(f32),
        "lnf_w": pad_to(params["lnf_w"], (1, Dp)).astype(f32),
        "lnf_b": pad_to(params["lnf_b"], (1, Dp)).astype(f32),
    }


# ----------------------------- tiling / budgets -------------------------------

def _vmem_capacity_bytes():
    try:
        info = pltpu.get_tpu_info()
        cap = int(getattr(info, "vmem_capacity_bytes", 0) or 0)
        if cap > 0:
            return cap
    except Exception:
        pass
    return 64 * 1024 * 1024  # conservative fallback: v7x per-TensorCore VMEM


def _vmem_need_bytes(tm, dp, tp, cp, wbytes, xbytes):
    """Everything the kernel keeps live in VMEM per grid step (incl. intermediates)."""
    weight_block = 2 * dp * (tp + cp) * wbytes            # w1,w2,w3,w4 (one layer)
    small_block = (8 * dp + tp + cp) * 4                  # LN params + biases (f32)
    io_blocks = 2 * 2 * tm * dp * xbytes                  # x in + out, double-buffered
    scratch = tm * dp * 4                                 # resident f32 activation
    # GELU/hidden activations in f32 plus their bf16 casts, and a few f32
    # residual / LN temporaries -- previously unbudgeted (review item).
    inter = tm * (tp + cp) * 6 + 4 * tm * dp * 4
    return 2 * (weight_block + small_block) + io_blocks + scratch + inter


def _choose_row_tiling(bs, dp, tp, cp, wbytes, xbytes, tile_rows):
    cap = _vmem_capacity_bytes()
    usable = max(cap - 16 * 1024 * 1024, cap // 2)

    if tile_rows is None:
        # Generation-aware target: intensity vs streamed weights is ~tm FLOP/byte;
        # compute-bound needs ~650 (v6e) / ~310 (v7x) / ~240 (v5e).
        tm_gen_cap = 1024 if cap >= 100 * 1024 * 1024 else 512
        tm_pref = 128
        for cand in (1024, 512, 256, 128):
            if cand <= tm_gen_cap and _vmem_need_bytes(
                    cand, dp, tp, cp, wbytes, xbytes) <= usable:
                tm_pref = cand
                break
    else:
        tm_pref = _round_up(max(int(tile_rows), _SUBLANE), _SUBLANE)

    n_tiles = max(1, _cdiv(bs, tm_pref))
    if n_tiles == 1 and bs >= 256:
        n_tiles = 2          # enough work: feed both TensorCores on v7x
    if n_tiles > 1 and n_tiles % 2:
        n_tiles += 1         # even "parallel" split across v7x's two TCs
    tm = _round_up(_cdiv(bs, n_tiles), _SUBLANE)
    return tm, n_tiles, usable


# ----------------------------- forward ----------------------------------------

@functools.partial(jax.jit, static_argnames=("tile_rows",))
def mlp_mixer_forward(x, pp, tile_rows=None):
    """x: (B, S, d_model) f32; pp: output of prepare_params. Returns (B, S, d_model)."""
    B, S, D = x.shape
    BS = B * S
    L, Dp, Tp = pp["w1"].shape
    Cp = pp["w3"].shape[-1]
    wbytes = jnp.dtype(pp["w1"].dtype).itemsize
    xbytes = jnp.dtype(x.dtype).itemsize

    tm, n_row_tiles, usable_vmem = _choose_row_tiling(
        BS, Dp, Tp, Cp, wbytes, xbytes, tile_rows)
    BSp = tm * n_row_tiles

    x2 = jnp.pad(x.reshape(BS, D), ((0, BSp - BS), (0, Dp - D)))

    # Per-layer params: squeeze the leading layer dim out of the kernel refs.
    vec = lambda d: pl.BlockSpec((None, 1, d), lambda i, l: (l, 0, 0))
    mat = lambda a, b: pl.BlockSpec((None, a, b), lambda i, l: (l, 0, 0))

    grid_spec = pltpu.PrefetchScalarGridSpec(
        num_scalar_prefetch=0,
        grid=(n_row_tiles, L),
        in_specs=[
            pl.BlockSpec((tm, Dp), lambda i, l: (i, 0)),          # x
            vec(Dp), vec(Dp),                                     # ln1 w, b
            mat(Dp, Tp), vec(Tp),                                 # w1, b1
            mat(Tp, Dp), vec(Dp),                                 # w2, b2
            vec(Dp), vec(Dp),                                     # ln2 w, b
            mat(Dp, Cp), vec(Cp),                                 # w3, b3
            mat(Cp, Dp), vec(Dp),                                 # w4, b4
            pl.BlockSpec((1, Dp), lambda i, l: (0, 0)),           # final ln w
            pl.BlockSpec((1, Dp), lambda i, l: (0, 0)),           # final ln b
        ],
        out_specs=pl.BlockSpec((tm, Dp), lambda i, l: (i, 0)),
        scratch_shapes=[pltpu.VMEM((tm, Dp), jnp.float32)],
    )

    weight_block = 2 * Dp * (Tp + Cp) * wbytes
    small_block = (8 * Dp + Tp + Cp) * 4
    cost = pl.CostEstimate(
        flops=4 * BSp * L * Dp * (Tp + Cp),
        transcendentals=BSp * L * (Tp + Cp),
        bytes_accessed=2 * BSp * Dp * xbytes
        + n_row_tiles * L * (weight_block + small_block),
    )

    out = pl.pallas_call(
        functools.partial(_mixer_kernel, inv_d=1.0 / D, d_true=D),
        out_shape=jax.ShapeDtypeStruct((BSp, Dp), x.dtype),
        grid_spec=grid_spec,
        compiler_params=pltpu.CompilerParams(
            dimension_semantics=("parallel", "arbitrary"),
            vmem_limit_bytes=int(usable_vmem)),
        cost_estimate=cost,
    )(x2,
      pp["ln1_w"], pp["ln1_b"], pp["w1"], pp["b1"], pp["w2"], pp["b2"],
      pp["ln2_w"], pp["ln2_b"], pp["w3"], pp["b3"], pp["w4"], pp["b4"],
      pp["lnf_w"], pp["lnf_b"])

    return out[:BS, :D].reshape(B, S, D)


# ----------------------------- reference ---------------------------------------

def _layernorm_ref(h, w, b):
    mu = jnp.mean(h, axis=-1, keepdims=True)
    var = jnp.mean((h - mu) ** 2, axis=-1, keepdims=True)
    return (h - mu) * jax.lax.rsqrt(var + LN_EPS) * w + b


def mlp_mixer_reference(x, params, weight_dtype=jnp.bfloat16):
    """Pure-JAX reference mirroring the PyTorch forward (exact erf GELU, bf16
    dot inputs to match the kernel's mixed-precision path, f32 accumulation)."""
    L = params["w1"].shape[0]
    h = x.astype(jnp.float32)

    def dot(a, w):
        return jnp.dot(a.astype(weight_dtype), w.astype(weight_dtype),
                       preferred_element_type=jnp.float32)

    for l in range(L):
        t = _layernorm_ref(h, params["ln1_w"][l], params["ln1_b"][l])
        t = _gelu_erf(dot(t, params["w1"][l]) + params["b1"][l])
        t = dot(t, params["w2"][l]) + params["b2"][l]
        h = h + t
        c = _layernorm_ref(h, params["ln2_w"][l], params["ln2_b"][l])
        c = _gelu_erf(dot(c, params["w3"][l]) + params["b3"][l])
        c = dot(c, params["w4"][l]) + params["b4"][l]
        h = h + c
    return _layernorm_ref(h, params["lnf_w"][0], params["lnf_b"][0]).astype(x.dtype)


if __name__ == "__main__":
    # Small shapes consistent with the module's (B, S, d_model) forward.
    B, S, D = 2, 16, 32
    depth, tokens_mlp_dim, channels_mlp_dim = 2, 64, 48

    key = jax.random.PRNGKey(0)
    kx, kp = jax.random.split(key)
    x = jax.random.normal(kx, (B, S, D), dtype=jnp.float32)
    params = init_params(kp, D, depth, tokens_mlp_dim, channels_mlp_dim)
    pp = prepare_params(params)   # pad to 128-lane shapes, bf16 matmul weights

    out = mlp_mixer_forward(x, pp)
    out = jax.block_until_ready(out)

    ref = mlp_mixer_reference(x, params)
    assert out.shape == (B, S, D)
    assert jnp.allclose(out, ref, atol=5e-3, rtol=5e-3), \
        float(jnp.max(jnp.abs(out - ref)))

    print("KERNEL_OK")
</pallas_src>

<mosaic_0001>
module attributes {stable_mosaic.version = 11 : i64} {
  func.func @_mixer_kernel(%arg0: i32, %arg1: i32, %arg2: memref<32x128xf32, #tpu.memory_space<vmem>>, %arg3: memref<1x1x128xf32, #tpu.memory_space<vmem>>, %arg4: memref<1x1x128xf32, #tpu.memory_space<vmem>>, %arg5: memref<1x128x128xbf16, #tpu.memory_space<vmem>>, %arg6: memref<1x1x128xf32, #tpu.memory_space<vmem>>, %arg7: memref<1x128x128xbf16, #tpu.memory_space<vmem>>, %arg8: memref<1x1x128xf32, #tpu.memory_space<vmem>>, %arg9: memref<1x1x128xf32, #tpu.memory_space<vmem>>, %arg10: memref<1x1x128xf32, #tpu.memory_space<vmem>>, %arg11: memref<1x128x128xbf16, #tpu.memory_space<vmem>>, %arg12: memref<1x1x128xf32, #tpu.memory_space<vmem>>, %arg13: memref<1x128x128xbf16, #tpu.memory_space<vmem>>, %arg14: memref<1x1x128xf32, #tpu.memory_space<vmem>>, %arg15: memref<1x128xf32, #tpu.memory_space<vmem>>, %arg16: memref<1x128xf32, #tpu.memory_space<vmem>>, %arg17: memref<32x128xf32, #tpu.memory_space<vmem>>, %arg18: memref<32x128xf32, #tpu.memory_space<vmem>>) attributes {dimension_semantics = [#tpu.dimension_semantics<parallel>, #tpu.dimension_semantics<arbitrary>], iteration_bounds = array<i64: 1, 2>, scalar_prefetch = 0 : i64, scratch_operands = 1 : i64, tpu.core_type = #tpu.core_type<tc>, window_params = [{transform_indices = @transform_0, window_bounds = array<i64: 32, 128>}, {transform_indices = @transform_1, window_bounds = array<i64: 1, 1, 128>}, {transform_indices = @transform_2, window_bounds = array<i64: 1, 1, 128>}, {transform_indices = @transform_3, window_bounds = array<i64: 1, 128, 128>}, {transform_indices = @transform_4, window_bounds = array<i64: 1, 1, 128>}, {transform_indices = @transform_5, window_bounds = array<i64: 1, 128, 128>}, {transform_indices = @transform_6, window_bounds = array<i64: 1, 1, 128>}, {transform_indices = @transform_7, window_bounds = array<i64: 1, 1, 128>}, {transform_indices = @transform_8, window_bounds = array<i64: 1, 1, 128>}, {transform_indices = @transform_9, window_bounds = array<i64: 1, 128, 128>}, {transform_indices = @transform_10, window_bounds = array<i64: 1, 1, 128>}, {transform_indices = @transform_11, window_bounds = array<i64: 1, 128, 128>}, {transform_indices = @transform_12, window_bounds = array<i64: 1, 1, 128>}, {pipeline_mode = #tpu.pipeline_mode<synchronous>, transform_indices = @transform_13, window_bounds = array<i64: 1, 128>}, {pipeline_mode = #tpu.pipeline_mode<synchronous>, transform_indices = @transform_14, window_bounds = array<i64: 1, 128>}, {transform_indices = @transform_15, window_bounds = array<i64: 32, 128>}]} {
    %c0_i32 = arith.constant 0 : i32
    %0 = arith.cmpi eq, %arg1, %c0_i32 : i32
    %1 = arith.extui %0 : i1 to i32
    %c0_i32_0 = arith.constant 0 : i32
    %2 = arith.cmpi ne, %1, %c0_i32_0 : i32
    scf.if %2 {
      %c0_64 = arith.constant 0 : index
      %c0_65 = arith.constant 0 : index
      %127 = vector.load %arg2[%c0_64, %c0_65] : memref<32x128xf32, #tpu.memory_space<vmem>>, vector<32x128xf32>
      %c0_66 = arith.constant 0 : index
      %c0_67 = arith.constant 0 : index
      %128 = vector.load %arg18[%c0_66, %c0_67] : memref<32x128xf32, #tpu.memory_space<vmem>>, vector<32x128xf32>
      tpu.vector_store %arg18[%c0_66, %c0_67], %127 {strides = array<i32>} : memref<32x128xf32, #tpu.memory_space<vmem>>, vector<32x128xf32>,
    } else {
    }
    %c0 = arith.constant 0 : index
    %c0_1 = arith.constant 0 : index
    %3 = vector.load %arg18[%c0, %c0_1] : memref<32x128xf32, #tpu.memory_space<vmem>>, vector<32x128xf32>
    %4 = tpu.iota {dimensions = array<i32: 1>} : vector<1x128xi32>
    %c32_i32 = arith.constant 32 : i32
    %5 = vector.broadcast %c32_i32 : i32 to vector<1x128xi32>
    %6 = arith.cmpi slt, %4, %5 : vector<1x128xi32>
    %c0_2 = arith.constant 0 : index
    %c0_3 = arith.constant 0 : index
    %c0_4 = arith.constant 0 : index
    %7 = vector.load %arg3[%c0_2, %c0_3, %c0_4] : memref<1x1x128xf32, #tpu.memory_space<vmem>>, vector<1x1x128xf32>
    %8 = vector.shape_cast %7 : vector<1x1x128xf32> to vector<1x128xf32>
    %c0_5 = arith.constant 0 : index
    %c0_6 = arith.constant 0 : index
    %c0_7 = arith.constant 0 : index
    %9 = vector.load %arg4[%c0_5, %c0_6, %c0_7] : memref<1x1x128xf32, #tpu.memory_space<vmem>>, vector<1x1x128xf32>
    %10 = vector.shape_cast %9 : vector<1x1x128xf32> to vector<1x128xf32>
    %cst = arith.constant dense<0.000000e+00> : vector<32xf32>
    %11 = vector.multi_reduction <add>, %3, %cst [1] : vector<32x128xf32> to vector<32xf32>
    %12 = vector.shape_cast %11 : vector<32xf32> to vector<32x1xf32>
    %cst_8 = arith.constant 3.125000e-02 : f32
    %13 = vector.broadcast %cst_8 : f32 to vector<32x1xf32>
    %14 = arith.mulf %12, %13 : vector<32x1xf32>
    %15 = vector.broadcast %14 : vector<32x1xf32> to vector<32x128xf32>
    %16 = arith.subf %3, %15 : vector<32x128xf32>
    %cst_9 = arith.constant 0.000000e+00 : f32
    %17 = vector.shape_cast %6 : vector<1x128xi1> to vector<1x128xi1>
    %18 = vector.broadcast %17 : vector<1x128xi1> to vector<32x128xi1>
    %19 = vector.broadcast %cst_9 : f32 to vector<32x128xf32>
    %20 = arith.select %18, %16, %19 : vector<32x128xi1>, vector<32x128xf32>
    %21 = arith.mulf %20, %20 : vector<32x128xf32>
    %cst_10 = arith.constant dense<0.000000e+00> : vector<32xf32>
    %22 = vector.multi_reduction <add>, %21, %cst_10 [1] : vector<32x128xf32> to vector<32xf32>
    %23 = vector.shape_cast %22 : vector<32xf32> to vector<32x1xf32>
    %cst_11 = arith.constant 3.125000e-02 : f32
    %24 = vector.broadcast %cst_11 : f32 to vector<32x1xf32>
    %25 = arith.mulf %23, %24 : vector<32x1xf32>
    %cst_12 = arith.constant 9.99999974E-6 : f32
    %26 = vector.broadcast %cst_12 : f32 to vector<32x1xf32>
    %27 = arith.addf %25, %26 : vector<32x1xf32>
    %28 = math.rsqrt %27 : vector<32x1xf32>
    %29 = vector.broadcast %28 : vector<32x1xf32> to vector<32x128xf32>
    %30 = arith.mulf %20, %29 : vector<32x128xf32>
    %31 = vector.broadcast %8 : vector<1x128xf32> to vector<32x128xf32>
    %32 = arith.mulf %30, %31 : vector<32x128xf32>
    %33 = vector.broadcast %10 : vector<1x128xf32> to vector<32x128xf32>
    %34 = arith.addf %32, %33 : vector<32x128xf32>
    %c0_13 = arith.constant 0 : index
    %c0_14 = arith.constant 0 : index
    %c0_15 = arith.constant 0 : index
    %35 = vector.load %arg5[%c0_13, %c0_14, %c0_15] : memref<1x128x128xbf16, #tpu.memory_space<vmem>>, vector<1x128x128xbf16>
    %36 = vector.shape_cast %35 : vector<1x128x128xbf16> to vector<128x128xbf16>
    %c0_16 = arith.constant 0 : index
    %c0_17 = arith.constant 0 : index
    %c0_18 = arith.constant 0 : index
    %37 = vector.load %arg7[%c0_16, %c0_17, %c0_18] : memref<1x128x128xbf16, #tpu.memory_space<vmem>>, vector<1x128x128xbf16>
    %38 = vector.shape_cast %37 : vector<1x128x128xbf16> to vector<128x128xbf16>
    %39 = arith.truncf %34 : vector<32x128xf32> to vector<32x128xbf16>
    %cst_19 = arith.constant dense<0.000000e+00> : vector<32x128xf32>
    %40 = tpu.matmul %39, %36, %cst_19 {dimension_numbers = #tpu.dot_dimension_numbers<[1], [0], [0], [1], [0, 0, 1, 1], [], []>} : vector<32x128xbf16>, vector<128x128xbf16>, vector<32x128xf32> -> vector<32x128xf32>
    %c0_20 = arith.constant 0 : index
    %c0_21 = arith.constant 0 : index
    %c0_22 = arith.constant 0 : index
    %41 = vector.load %arg6[%c0_20, %c0_21, %c0_22] : memref<1x1x128xf32, #tpu.memory_space<vmem>>, vector<1x1x128xf32>
    %42 = vector.shape_cast %41 : vector<1x1x128xf32> to vector<1x128xf32>
    %43 = vector.broadcast %42 : vector<1x128xf32> to vector<32x128xf32>
    %44 = arith.addf %40, %43 : vector<32x128xf32>
    %cst_23 = arith.constant 5.000000e-01 : f32
    %45 = vector.broadcast %cst_23 : f32 to vector<32x128xf32>
    %46 = arith.mulf %45, %44 : vector<32x128xf32>
    %cst_24 = arith.constant 4.471500e-02 : f32
    %47 = vector.broadcast %cst_24 : f32 to vector<32x128xf32>
    %48 = arith.mulf %47, %44 : vector<32x128xf32>
    %49 = arith.mulf %48, %44 : vector<32x128xf32>
    %50 = arith.mulf %49, %44 : vector<32x128xf32>
    %51 = arith.addf %44, %50 : vector<32x128xf32>
    %cst_25 = arith.constant 0.797884583 : f32
    %52 = vector.broadcast %cst_25 : f32 to vector<32x128xf32>
    %53 = arith.mulf %52, %51 : vector<32x128xf32>
    %54 = math.tanh %53 : vector<32x128xf32>
    %cst_26 = arith.constant 1.000000e+00 : f32
    %55 = vector.broadcast %cst_26 : f32 to vector<32x128xf32>
    %56 = arith.addf %55, %54 : vector<32x128xf32>
    %57 = arith.mulf %46, %56 : vector<32x128xf32>
    %58 = arith.truncf %57 : vector<32x128xf32> to vector<32x128xbf16>
    %cst_27 = arith.constant dense<0.000000e+00> : vector<32x128xf32>
    %59 = tpu.matmul %58, %38, %cst_27 {dimension_numbers = #tpu.dot_dimension_numbers<[1], [0], [0], [1], [0, 0, 1, 1], [], []>} : vector<32x128xbf16>, vector<128x128xbf16>, vector<32x128xf32> -> vector<32x128xf32>
    %c0_28 = arith.constant 0 : index
    %c0_29 = arith.constant 0 : index
    %c0_30 = arith.constant 0 : index
    %60 = vector.load %arg8[%c0_28, %c0_29, %c0_30] : memref<1x1x128xf32, #tpu.memory_space<vmem>>, vector<1x1x128xf32>
    %61 = vector.shape_cast %60 : vector<1x1x128xf32> to vector<1x128xf32>
    %62 = vector.broadcast %61 : vector<1x128xf32> to vector<32x128xf32>
    %63 = arith.addf %59, %62 : vector<32x128xf32>
    %64 = arith.addf %3, %63 : vector<32x128xf32>
    %c0_31 = arith.constant 0 : index
    %c0_32 = arith.constant 0 : index
    %c0_33 = arith.constant 0 : index
    %65 = vector.load %arg9[%c0_31, %c0_32, %c0_33] : memref<1x1x128xf32, #tpu.memory_space<vmem>>, vector<1x1x128xf32>
    %66 = vector.shape_cast %65 : vector<1x1x128xf32> to vector<1x128xf32>
    %c0_34 = arith.constant 0 : index
    %c0_35 = arith.constant 0 : index
    %c0_36 = arith.constant 0 : index
    %67 = vector.load %arg10[%c0_34, %c0_35, %c0_36] : memref<1x1x128xf32, #tpu.memory_space<vmem>>, vector<1x1x128xf32>
    %68 = vector.shape_cast %67 : vector<1x1x128xf32> to vector<1x128xf32>
    %cst_37 = arith.constant dense<0.000000e+00> : vector<32xf32>
    %69 = vector.multi_reduction <add>, %64, %cst_37 [1] : vector<32x128xf32> to vector<32xf32>
    %70 = vector.shape_cast %69 : vector<32xf32> to vector<32x1xf32>
    %cst_38 = arith.constant 3.125000e-02 : f32
    %71 = vector.broadcast %cst_38 : f32 to vector<32x1xf32>
    %72 = arith.mulf %70, %71 : vector<32x1xf32>
    %73 = vector.broadcast %72 : vector<32x1xf32> to vector<32x128xf32>
    %74 = arith.subf %64, %73 : vector<32x128xf32>
    %cst_39 = arith.constant 0.000000e+00 : f32
    %75 = vector.shape_cast %6 : vector<1x128xi1> to vector<1x128xi1>
    %76 = vector.broadcast %75 : vector<1x128xi1> to vector<32x128xi1>
    %77 = vector.broadcast %cst_39 : f32 to vector<32x128xf32>
    %78 = arith.select %76, %74, %77 : vector<32x128xi1>, vector<32x128xf32>
    %79 = arith.mulf %78, %78 : vector<32x128xf32>
    %cst_40 = arith.constant dense<0.000000e+00> : vector<32xf32>
    %80 = vector.multi_reduction <add>, %79, %cst_40 [1] : vector<32x128xf32> to vector<32xf32>
    %81 = vector.shape_cast %80 : vector<32xf32> to vector<32x1xf32>
    %cst_41 = arith.constant 3.125000e-02 : f32
    %82 = vector.broadcast %cst_41 : f32 to vector<32x1xf32>
    %83 = arith.mulf %81, %82 : vector<32x1xf32>
    %cst_42 = arith.constant 9.99999974E-6 : f32
    %84 = vector.broadcast %cst_42 : f32 to vector<32x1xf32>
    %85 = arith.addf %83, %84 : vector<32x1xf32>
    %86 = math.rsqrt %85 : vector<32x1xf32>
    %87 = vector.broadcast %86 : vector<32x1xf32> to vector<32x128xf32>
    %88 = arith.mulf %78, %87 : vector<32x128xf32>
    %89 = vector.broadcast %66 : vector<1x128xf32> to vector<32x128xf32>
    %90 = arith.mulf %88, %89 : vector<32x128xf32>
    %91 = vector.broadcast %68 : vector<1x128xf32> to vector<32x128xf32>
    %92 = arith.addf %90, %91 : vector<32x128xf32>
    %c0_43 = arith.constant 0 : index
    %c0_44 = arith.constant 0 : index
    %c0_45 = arith.constant 0 : index
    %93 = vector.load %arg11[%c0_43, %c0_44, %c0_45] : memref<1x128x128xbf16, #tpu.memory_space<vmem>>, vector<1x128x128xbf16>
    %94 = vector.shape_cast %93 : vector<1x128x128xbf16> to vector<128x128xbf16>
    %c0_46 = arith.constant 0 : index
    %c0_47 = arith.constant 0 : index
    %c0_48 = arith.constant 0 : index
    %95 = vector.load %arg13[%c0_46, %c0_47, %c0_48] : memref<1x128x128xbf16, #tpu.memory_space<vmem>>, vector<1x128x128xbf16>
    %96 = vector.shape_cast %95 : vector<1x128x128xbf16> to vector<128x128xbf16>
    %97 = arith.truncf %92 : vector<32x128xf32> to vector<32x128xbf16>
    %cst_49 = arith.constant dense<0.000000e+00> : vector<32x128xf32>
    %98 = tpu.matmul %97, %94, %cst_49 {dimension_numbers = #tpu.dot_dimension_numbers<[1], [0], [0], [1], [0, 0, 1, 1], [], []>} : vector<32x128xbf16>, vector<128x128xbf16>, vector<32x128xf32> -> vector<32x128xf32>
    %c0_50 = arith.constant 0 : index
    %c0_51 = arith.constant 0 : index
    %c0_52 = arith.constant 0 : index
    %99 = vector.load %arg12[%c0_50, %c0_51, %c0_52] : memref<1x1x128xf32, #tpu.memory_space<vmem>>, vector<1x1x128xf32>
    %100 = vector.shape_cast %99 : vector<1x1x128xf32> to vector<1x128xf32>
    %101 = vector.broadcast %100 : vector<1x128xf32> to vector<32x128xf32>
    %102 = arith.addf %98, %101 : vector<32x128xf32>
    %cst_53 = arith.constant 5.000000e-01 : f32
    %103 = vector.broadcast %cst_53 : f32 to vector<32x128xf32>
    %104 = arith.mulf %103, %102 : vector<32x128xf32>
    %cst_54 = arith.constant 4.471500e-02 : f32
    %105 = vector.broadcast %cst_54 : f32 to vector<32x128xf32>
    %106 = arith.mulf %105, %102 : vector<32x128xf32>
    %107 = arith.mulf %106, %102 : vector<32x128xf32>
    %108 = arith.mulf %107, %102 : vector<32x128xf32>
    %109 = arith.addf %102, %108 : vector<32x128xf32>
    %cst_55 = arith.constant 0.797884583 : f32
    %110 = vector.broadcast %cst_55 : f32 to vector<32x128xf32>
    %111 = arith.mulf %110, %109 : vector<32x128xf32>
    %112 = math.tanh %111 : vector<32x128xf32>
    %cst_56 = arith.constant 1.000000e+00 : f32
    %113 = vector.broadcast %cst_56 : f32 to vector<32x128xf32>
    %114 = arith.addf %113, %112 : vector<32x128xf32>
    %115 = arith.mulf %104, %114 : vector<32x128xf32>
    %116 = arith.truncf %115 : vector<32x128xf32> to vector<32x128xbf16>
    %cst_57 = arith.constant dense<0.000000e+00> : vector<32x128xf32>
    %117 = tpu.matmul %116, %96, %cst_57 {dimension_numbers = #tpu.dot_dimension_numbers<[1], [0], [0], [1], [0, 0, 1, 1], [], []>} : vector<32x128xbf16>, vector<128x128xbf16>, vector<32x128xf32> -> vector<32x128xf32>
    %c0_58 = arith.constant 0 : index
    %c0_59 = arith.constant 0 : index
    %c0_60 = arith.constant 0 : index
    %118 = vector.load %arg14[%c0_58, %c0_59, %c0_60] : memref<1x1x128xf32, #tpu.memory_space<vmem>>, vector<1x1x128xf32>
    %119 = vector.shape_cast %118 : vector<1x1x128xf32> to vector<1x128xf32>
    %120 = vector.broadcast %119 : vector<1x128xf32> to vector<32x128xf32>
    %121 = arith.addf %117, %120 : vector<32x128xf32>
    %122 = arith.addf %64, %121 : vector<32x128xf32>
    %c0_61 = arith.constant 0 : index
    %c0_62 = arith.constant 0 : index
    %123 = vector.load %arg18[%c0_61, %c0_62] : memref<32x128xf32, #tpu.memory_space<vmem>>, vector<32x128xf32>
    tpu.vector_store %arg18[%c0_61, %c0_62], %122 {strides = array<i32>} : memref<32x128xf32, #tpu.memory_space<vmem>>, vector<32x128xf32>,
    %c1_i32 = arith.constant 1 : i32
    %124 = arith.cmpi eq, %arg1, %c1_i32 : i32
    %125 = arith.extui %124 : i1 to i32
    %c0_i32_63 = arith.constant 0 : i32
    %126 = arith.cmpi ne, %125, %c0_i32_63 : i32
    scf.if %126 {
      %c0_64 = arith.constant 0 : index
      %c0_65 = arith.constant 0 : index
      %127 = vector.load %arg15[%c0_64, %c0_65] : memref<1x128xf32, #tpu.memory_space<vmem>>, vector<1x128xf32>
      %c0_66 = arith.constant 0 : index
      %c0_67 = arith.constant 0 : index
      %128 = vector.load %arg16[%c0_66, %c0_67] : memref<1x128xf32, #tpu.memory_space<vmem>>, vector<1x128xf32>
      %cst_68 = arith.constant dense<0.000000e+00> : vector<32xf32>
      %129 = vector.multi_reduction <add>, %122, %cst_68 [1] : vector<32x128xf32> to vector<32xf32>
      %130 = vector.shape_cast %129 : vector<32xf32> to vector<32x1xf32>
      %cst_69 = arith.constant 3.125000e-02 : f32
      %131 = vector.broadcast %cst_69 : f32 to vector<32x1xf32>
      %132 = arith.mulf %130, %131 : vector<32x1xf32>
      %133 = vector.broadcast %132 : vector<32x1xf32> to vector<32x128xf32>
      %134 = arith.subf %122, %133 : vector<32x128xf32>
      %cst_70 = arith.constant 0.000000e+00 : f32
      %135 = vector.shape_cast %6 : vector<1x128xi1> to vector<1x128xi1>
      %136 = vector.broadcast %135 : vector<1x128xi1> to vector<32x128xi1>
      %137 = vector.broadcast %cst_70 : f32 to vector<32x128xf32>
      %138 = arith.select %136, %134, %137 : vector<32x128xi1>, vector<32x128xf32>
      %139 = arith.mulf %138, %138 : vector<32x128xf32>
      %cst_71 = arith.constant dense<0.000000e+00> : vector<32xf32>
      %140 = vector.multi_reduction <add>, %139, %cst_71 [1] : vector<32x128xf32> to vector<32xf32>
      %141 = vector.shape_cast %140 : vector<32xf32> to vector<32x1xf32>
      %cst_72 = arith.constant 3.125000e-02 : f32
      %142 = vector.broadcast %cst_72 : f32 to vector<32x1xf32>
      %143 = arith.mulf %141, %142 : vector<32x1xf32>
      %cst_73 = arith.constant 9.99999974E-6 : f32
      %144 = vector.broadcast %cst_73 : f32 to vector<32x1xf32>
      %145 = arith.addf %143, %144 : vector<32x1xf32>
      %146 = math.rsqrt %145 : vector<32x1xf32>
      %147 = vector.broadcast %146 : vector<32x1xf32> to vector<32x128xf32>
      %148 = arith.mulf %138, %147 : vector<32x128xf32>
      %149 = vector.broadcast %127 : vector<1x128xf32> to vector<32x128xf32>
      %150 = arith.mulf %148, %149 : vector<32x128xf32>
      %151 = vector.broadcast %128 : vector<1x128xf32> to vector<32x128xf32>
      %152 = arith.addf %150, %151 : vector<32x128xf32>
      %c0_74 = arith.constant 0 : index
      %c0_75 = arith.constant 0 : index
      %153 = vector.load %arg17[%c0_74, %c0_75] : memref<32x128xf32, #tpu.memory_space<vmem>>, vector<32x128xf32>
      tpu.vector_store %arg17[%c0_74, %c0_75], %152 {strides = array<i32>} : memref<32x128xf32, #tpu.memory_space<vmem>>, vector<32x128xf32>,
    } else {
    }
    return
  }
  func.func @transform_0(%arg0: i32, %arg1: i32) -> (i32, i32) {
    %c0_i32 = arith.constant 0 : i32
    %c0_i32_0 = arith.constant 0 : i32
    return %arg0, %c0_i32 : i32, i32
  }
  func.func @transform_1(%arg0: i32, %arg1: i32) -> (i32, i32, i32) {
    %c0_i32 = arith.constant 0 : i32
    %c0_i32_0 = arith.constant 0 : i32
    %c0_i32_1 = arith.constant 0 : i32
    return %arg1, %c0_i32, %c0_i32_0 : i32, i32, i32
  }
  func.func @transform_2(%arg0: i32, %arg1: i32) -> (i32, i32, i32) {
    %c0_i32 = arith.constant 0 : i32
    %c0_i32_0 = arith.constant 0 : i32
    %c0_i32_1 = arith.constant 0 : i32
    return %arg1, %c0_i32, %c0_i32_0 : i32, i32, i32
  }
  func.func @transform_3(%arg0: i32, %arg1: i32) -> (i32, i32, i32) {
    %c0_i32 = arith.constant 0 : i32
    %c0_i32_0 = arith.constant 0 : i32
    %c0_i32_1 = arith.constant 0 : i32
    return %arg1, %c0_i32, %c0_i32_0 : i32, i32, i32
  }
  func.func @transform_4(%arg0: i32, %arg1: i32) -> (i32, i32, i32) {
    %c0_i32 = arith.constant 0 : i32
    %c0_i32_0 = arith.constant 0 : i32
    %c0_i32_1 = arith.constant 0 : i32
    return %arg1, %c0_i32, %c0_i32_0 : i32, i32, i32
  }
  func.func @transform_5(%arg0: i32, %arg1: i32) -> (i32, i32, i32) {
    %c0_i32 = arith.constant 0 : i32
    %c0_i32_0 = arith.constant 0 : i32
    %c0_i32_1 = arith.constant 0 : i32
    return %arg1, %c0_i32, %c0_i32_0 : i32, i32, i32
  }
  func.func @transform_6(%arg0: i32, %arg1: i32) -> (i32, i32, i32) {
    %c0_i32 = arith.constant 0 : i32
    %c0_i32_0 = arith.constant 0 : i32
    %c0_i32_1 = arith.constant 0 : i32
    return %arg1, %c0_i32, %c0_i32_0 : i32, i32, i32
  }
  func.func @transform_7(%arg0: i32, %arg1: i32) -> (i32, i32, i32) {
    %c0_i32 = arith.constant 0 : i32
    %c0_i32_0 = arith.constant 0 : i32
    %c0_i32_1 = arith.constant 0 : i32
    return %arg1, %c0_i32, %c0_i32_0 : i32, i32, i32
  }
  func.func @transform_8(%arg0: i32, %arg1: i32) -> (i32, i32, i32) {
    %c0_i32 = arith.constant 0 : i32
    %c0_i32_0 = arith.constant 0 : i32
    %c0_i32_1 = arith.constant 0 : i32
    return %arg1, %c0_i32, %c0_i32_0 : i32, i32, i32
  }
  func.func @transform_9(%arg0: i32, %arg1: i32) -> (i32, i32, i32) {
    %c0_i32 = arith.constant 0 : i32
    %c0_i32_0 = arith.constant 0 : i32
    %c0_i32_1 = arith.constant 0 : i32
    return %arg1, %c0_i32, %c0_i32_0 : i32, i32, i32
  }
  func.func @transform_10(%arg0: i32, %arg1: i32) -> (i32, i32, i32) {
    %c0_i32 = arith.constant 0 : i32
    %c0_i32_0 = arith.constant 0 : i32
    %c0_i32_1 = arith.constant 0 : i32
    return %arg1, %c0_i32, %c0_i32_0 : i32, i32, i32
  }
  func.func @transform_11(%arg0: i32, %arg1: i32) -> (i32, i32, i32) {
    %c0_i32 = arith.constant 0 : i32
    %c0_i32_0 = arith.constant 0 : i32
    %c0_i32_1 = arith.constant 0 : i32
    return %arg1, %c0_i32, %c0_i32_0 : i32, i32, i32
  }
  func.func @transform_12(%arg0: i32, %arg1: i32) -> (i32, i32, i32) {
    %c0_i32 = arith.constant 0 : i32
    %c0_i32_0 = arith.constant 0 : i32
    %c0_i32_1 = arith.constant 0 : i32
    return %arg1, %c0_i32, %c0_i32_0 : i32, i32, i32
  }
  func.func @transform_13(%arg0: i32, %arg1: i32) -> (i32, i32) {
    %c0_i32 = arith.constant 0 : i32
    %c0_i32_0 = arith.constant 0 : i32
    %c0_i32_1 = arith.constant 0 : i32
    return %c0_i32, %c0_i32_0 : i32, i32
  }
  func.func @transform_14(%arg0: i32, %arg1: i32) -> (i32, i32) {
    %c0_i32 = arith.constant 0 : i32
    %c0_i32_0 = arith.constant 0 : i32
    %c0_i32_1 = arith.constant 0 : i32
    return %c0_i32, %c0_i32_0 : i32, i32
  }
  func.func @transform_15(%arg0: i32, %arg1: i32) -> (i32, i32) {
    %c0_i32 = arith.constant 0 : i32
    %c0_i32_0 = arith.constant 0 : i32
    return %arg0, %c0_i32 : i32, i32
  }
}

</mosaic_0001>

<bundles_post_ra>
// kernel: mlp_mixer_forward.1
= control target key start
LH: loop header
LB: loop body
LE: loop exit
PB: predicated region body
PF: predicated region fallthrough
CT: control target
= control target key end

     0   :  { %s2824_s0 = inlined_call_operand.vmem [shape: f32[32,128], index: 0, kind: input, shape index: {}]   ;;  %s2825_s1 = inlined_call_operand.vmem [shape: f32[2,1,128], index: 1, kind: input, shape index: {}]   ;;  %s2826_s2 = inlined_call_operand.vmem [shape: f32[2,1,128], index: 2, kind: input, shape index: {}]   ;;  %s2827_s3 = inlined_call_operand.hbm [shape: bf16[2,128,128], index: 3, kind: input, shape index: {}]   ;;  %s2828_s4 = inlined_call_operand.vmem [shape: f32[2,1,128], index: 4, kind: input, shape index: {}]   ;;  %s2829_s5 = inlined_call_operand.hbm [shape: bf16[2,128,128], index: 5, kind: input, shape index: {}]   ;;  %s2830_s6 = inlined_call_operand.vmem [shape: f32[2,1,128], index: 6, kind: input, shape index: {}]   ;;  %s2831_s7 = inlined_call_operand.vmem [shape: f32[2,1,128], index: 7, kind: input, shape index: {}]   ;;  %s2832_s8 = inlined_call_operand.vmem [shape: f32[2,1,128], index: 8, kind: input, shape index: {}]   ;;  %s2833_s9 = inlined_call_operand.hbm [shape: bf16[2,128,128], index: 9, kind: input, shape index: {}]   ;;  %s2834_s10 = inlined_call_operand.vmem [shape: f32[2,1,128], index: 10, kind: input, shape index: {}]   ;;  %s2835_s11 = inlined_call_operand.hbm [shape: bf16[2,128,128], index: 11, kind: input, shape index: {}]   ;;  %s2836_s12 = inlined_call_operand.vmem [shape: f32[2,1,128], index: 12, kind: input, shape index: {}]   ;;  %s2837_s13 = inlined_call_operand.vmem [shape: f32[1,128], index: 13, kind: input, shape index: {}]   ;;  %s2838_s14 = inlined_call_operand.vmem [shape: f32[1,128], index: 14, kind: input, shape index: {}]   ;;  %s2839_s15 = inlined_call_operand.hbm [shape: f32[32,128], index: 15, kind: output, shape index: {}]  }
   0x1   :  { %2848 = sst [smem:[#allocation22_spill]] %s2824_s0 }
   0x2   :  { %2849 = sst [smem:[#allocation23_spill]] %s2827_s3 }
   0x3   :  { %2850 = sst [smem:[#allocation24_spill]] %s2829_s5 }
   0x4   :  { %2851 = sst [smem:[#allocation25_spill]] %s2832_s8 }
   0x5   :  { %2852 = sst [smem:[#allocation26_spill]] %s2833_s9 }
   0x6   :  { %2853 = sst [smem:[#allocation27_spill]] %s2834_s10 }
   0x7   :  { %2854 = sst [smem:[#allocation28_spill]] %s2835_s11 }
   0x8   :  { %2855 = sst [smem:[#allocation29_spill]] %s2836_s12 }
   0x9   :  { %2856 = sst [smem:[#allocation30_spill]] %s2837_s13 }
   0xa   :  { %2857 = sst [smem:[#allocation31_spill]] %s2838_s14 }
   0xb   :  { %2858 = sst [smem:[#allocation32_spill]] %s2839_s15 }
   0xc   :  { %20 = vsyncpa [#allocation4], 0 }
   0xd   :  { %22 = vsyncpa [#allocation4 + $0x1], 0 }
   0xe   :  { %23 = vsyncpa [#allocation7], 0 }
   0xf   :  { %25 = vsyncpa [#allocation7 + $0x1], 0 }
  0x10   :  { %26 = vsyncpa [#allocation10], 0 }
  0x11   :  { %28 = vsyncpa [#allocation10 + $0x1], 0 }
  0x12   :  { %29 = vsyncpa [#allocation5], 0  ;;  %s2443_s18 = smov 0   ;;  %s2445_s19 = smov 0  }
  0x13   :  { %s2447_s20 = smov 0   ;;  %s2449_s21 = smov 0  }
  0x14   :  { %s2451_s22 = smov 0   ;;  %s2453_s23 = smov 0  }
  0x15 LB: > { %2859 = sst [smem:[#allocation16_spill]] %s2336_s19  ;;  %s2472_s24 = sadd.s32 4294967295, %s2352_s23   ;;  %s2352_s23 = sphi %s2453_s23, %s35_s23   ;;  %s2348_s22 = sphi %s2451_s22, %s2893_s22   ;;  %s2344_s21 = sphi %s2449_s21, %s2892_s21   ;;  %s2340_s20 = sphi %s2447_s20, %s2891_s20   ;;  %s2336_s19 = sphi %s2445_s19, %s2890_s19   ;;  %s2332_s18 = sphi %s2443_s18, %s2889_s18  }
  0x16   : > { %2860 = sst [smem:[#allocation17_spill]] %s2340_s20  ;;  %s44_s25 = sadd.s32 1, %s2348_s22 }
  0x17   : > { %2861 = sst [smem:[#allocation18_spill]] %s2348_s22  ;;  %p45_p0 = scmp.ge.s32.totalorder %s44_s25, 2 }
  0x18   : > { %2862 = sst [smem:[#allocation19_spill]] %s2352_s23  ;;  %s132_s26 = sadd.s32 1, %s2340_s20 }
  0x19   : > { %p139_p1 = scmp.ne.s32.totalorder %s2340_s20, %s2336_s19  ;;  %p140_p2 = scmp.eq.s32.totalorder %s2352_s23, 0 }
  0x1a   : > { %s2895_s25 = smov (%p45_p0, %s44_s25), 0  ;;  %p145_p4 = scmp.ne.s32.totalorder %s2336_s19, %s2332_s18 }
  0x1b   : > { %2863 = sst [smem:[#allocation20_spill]] %s2895_s25  ;;  %p141_p3 = por %p140_p2, %p139_p1 }
  0x1c   : > { %s129_s27 = ssub.s32 %s2348_s22, %s2895_s25  ;;  %p146_p5 = scmp.eq.s32.totalorder %s2472_s24, 0 }
  0x1d   : > { %p130_p6 = scmp.eq.s32.totalorder %s129_s27, 0  ;;  %p2026_p8 = scmp.lt.s32.totalorder %s2352_s23, 2 }
  0x1e   : > { %p2485_p7 = por %p146_p5, %p145_p4  ;;  %s2494_s30 = sand.u32 1, %s2340_s20  }
  0x1f   : > { %s2491_s29 = scalar_select %p130_p6, %s2340_s20, %s132_s26  }
  0x20   : > { %s2497_s16 = sshll.u32 %s2348_s22, 10  ;;  %s2500_s17 = sshll.u32 %s2494_s30, 6 }
  0x21   : > { %2865 = sst [smem:[#allocation21_spill]] %s2491_s29  ;;  %p2502_p9 = pnand %p2026_p8, %p141_p3 }
  0x22   : > { %s525_s27 = sand.u32 1, %s2352_s23   ;;  %s2867_s5 = sld [smem:[#allocation24_spill]] }
  0x23   : > { %s529_s29 = scalar_lea.vmem [#allocation6], %s2500_s17  ;;  %p1824_p10 = scmp.ge.s32.totalorder %s2352_s23, 1 }
  0x24   : > { %s536_s20 = sshll.u32 %s529_s29, 4  ;;  %s2513_s22 = scalar_lea.sflag [#allocation7], %s525_s27  ;;  %s537_s20 = int_to_ptr.vmem [resolvable:$true] %s536_s20 }
  0x25   : > { %p2156_p11 = pneg %p2502_p9  ;;  %s2167_s14 = scalar_lea.vmem %s537_s20, 1024 }
  0x26   : > { %p2168_p12 = scmp.ne.s32.totalorder %s537_s20, %s2167_s14  ;;  %s2354_s13 = smov [#allocation6]  }
  0x27   : > { %s2172_s0 = sshll.u32 %s2354_s13, 4  ;;  %s2173_s0 = int_to_ptr.vmem [resolvable:$false] %s2172_s0 }
  0x28   : > { %s535_s26 = scalar_lea.hbm %s2867_s5, %s2497_s16  ;;  %p2170_p13 = pnand %p2168_p12, %p2156_p11 }
  0x29   : > { %s2174_s12 = scalar_lea.vmem %s2173_s0, 2048  ;;  %p2175_p1 = scmp.lt.s32.totalorder %s537_s20, %s2173_s0 }
  0x2a   : > { %p2171_p0 = pneg %p2170_p13  ;;  %p2176_p2 = scmp.lt.s32.totalorder %s2174_s12, %s2167_s14 }
  0x2c   : > { %p2177_p3 = por %p2176_p2, %p2175_p1 }
  0x2e   : > { %p2178_p4 = pnand %p2177_p3, %p2171_p0 }
  0x30   : > { %2181 = shalt.err (!%p2178_p4)
}
  0x31   : > { %s2844_s15 = smov 64   ;;  %s2356_s25 = smov 4  }
  0x32   : > { %2019 = dma.hbm_to_vmem [thread:$0]  (!%p2502_p9), %s535_s26, 1024, %s537_s20, %s2513_s22, %s2844_s15, %s2844_s15, %s2356_s25  }
  0x33   : > { %p616_p5 = scmp.lt.s32.totalorder %s2352_s23, 3  ;;  %s2869_s3 = sld [smem:[#allocation23_spill]] }
  0x34   : > { %s502_s29 = scalar_lea.vmem [#allocation3], %s2500_s17  ;;  %s499_s5 = scalar_lea.sflag [#allocation4], %s2494_s30 }
  0x35   : > { %p2529_p6 = pnand %p1824_p10, %p616_p5  ;;  %s509_s27 = sshll.u32 %s502_s29, 4  ;;  %s510_s27 = int_to_ptr.vmem [resolvable:$true] %s509_s27 }
  0x36   : > { %s2195_s10 = scalar_lea.vmem %s510_s27, 1024  ;;  %s2357_s20 = smov [#allocation3]  }
  0x37   : > { %p2196_p8 = scmp.ne.s32.totalorder %s510_s27, %s2195_s10  ;;  %s2200_s26 = sshll.u32 %s2357_s20, 4  ;;  %s2201_s26 = int_to_ptr.vmem [resolvable:$false] %s2200_s26 }
  0x38   : > { %s2202_s15 = scalar_lea.vmem %s2201_s26, 2048  ;;  %p2203_p10 = scmp.lt.s32.totalorder %s510_s27, %s2201_s26 }
  0x39   : > { %s508_s14 = scalar_lea.hbm %s2869_s3, %s2497_s16  ;;  %p2198_p12 = pnand %p2196_p8, %p2156_p11 }
  0x3a   : > { %p2204_p0 = scmp.lt.s32.totalorder %s2202_s15, %s2195_s10 }
  0x3b   : > { %p2199_p13 = pneg %p2198_p12 }
  0x3c   : > { %p2205_p1 = por %p2204_p0, %p2203_p10 }
  0x3e   : > { %p2206_p2 = pnand %p2205_p1, %p2199_p13 }
  0x40   : > { %2209 = shalt.err (!%p2206_p2)
}
  0x41   : > { %s2870_s12 = smov 64   ;;  %s2871_s9 = sld [smem:[#allocation26_spill]] }
  0x42   : > { %2016 = dma.hbm_to_vmem [thread:$0]  (!%p2502_p9), %s508_s14, 1024, %s510_s27, %s499_s5, %s2870_s12, %s2870_s12, %s2356_s25  }
  0x43   : > { %s568_s3 = scalar_lea.vmem [#allocation8], %s2500_s17  ;;  %s2358_s15 = smov [#allocation8]  }
  0x44   : > { %s575_s23 = sshll.u32 %s568_s3, 4  ;;  %s2228_s26 = sshll.u32 %s2358_s15, 4  ;;  %s576_s23 = int_to_ptr.vmem [resolvable:$true] %s575_s23  ;;  %s2229_s26 = int_to_ptr.vmem [resolvable:$false] %s2228_s26 }
  0x45   : > { %s2223_s10 = scalar_lea.vmem %s576_s23, 1024  ;;  %s2230_s8 = scalar_lea.vmem %s2229_s26, 2048 }
  0x46   : > { %p2224_p3 = scmp.ne.s32.totalorder %s576_s23, %s2223_s10  ;;  %p2231_p8 = scmp.lt.s32.totalorder %s576_s23, %s2229_s26 }
  0x47   : > { %s574_s20 = scalar_lea.hbm %s2871_s9, %s2497_s16  ;;  %p2232_p12 = scmp.lt.s32.totalorder %s2230_s8, %s2223_s10 }
  0x48   : > { %p2226_p4 = pnand %p2224_p3, %p2156_p11 }
  0x49   : > { %p2233_p13 = por %p2232_p12, %p2231_p8 }
  0x4a   : > { %p2227_p5 = pneg %p2226_p4 }
  0x4c   : > { %p2234_p10 = pnand %p2233_p13, %p2227_p5 }
  0x4e   : > { %2237 = shalt.err (!%p2234_p10)
}
  0x4f   : > { %2022 = dma.hbm_to_vmem [thread:$0]  (!%p2502_p9), %s574_s20, 1024, %s576_s23, %s2513_s22, %s2870_s12, %s2870_s12, %s2356_s25  }
  0x50   : > { %s2872_s11 = sld [smem:[#allocation28_spill]]  ;;  %s595_s27 = scalar_lea.vmem [#allocation9], %s2500_s17 }
  0x51   : > { %s602_s8 = sshll.u32 %s595_s27, 4  ;;  %s592_s13 = scalar_lea.sflag [#allocation10], %s2494_s30  ;;  %s603_s8 = int_to_ptr.vmem [resolvable:$true] %s602_s8 }
  0x52   : > { %s2251_s29 = scalar_lea.vmem %s603_s8, 1024  ;;  %s2359_s10 = smov [#allocation9]  }
  0x53   : > { %p2252_p0 = scmp.ne.s32.totalorder %s603_s8, %s2251_s29  ;;  %s2256_s15 = sshll.u32 %s2359_s10, 4  ;;  %s2257_s15 = int_to_ptr.vmem [resolvable:$false] %s2256_s15 }
  0x54   : > { %s2258_s26 = scalar_lea.vmem %s2257_s15, 2048  ;;  %p2259_p3 = scmp.lt.s32.totalorder %s603_s8, %s2257_s15 }
  0x55   : > { %p2254_p1 = pnand %p2252_p0, %p2156_p11  ;;  %p2260_p4 = scmp.lt.s32.totalorder %s2258_s26, %s2251_s29 }
  0x56   : > { %s601_s14 = scalar_lea.hbm %s2872_s11, %s2497_s16 }
  0x57   : > { %p2255_p2 = pneg %p2254_p1  ;;  %p2261_p5 = por %p2260_p4, %p2259_p3 }
  0x59   : > { %p2262_p8 = pnand %p2261_p5, %p2255_p2 }
  0x5b   : > { %2265 = shalt.err (!%p2262_p8)
}
  0x5c   : > { %2025 = dma.hbm_to_vmem [thread:$0]  (!%p2502_p9), %s601_s14, 1024, %s603_s8, %s592_s13, %s2870_s12, %s2870_s12, %s2356_s25  }
  0x5d   : > { %620 = sbr.rel (%p2529_p6) target bundleno = 1963 (0x7ab), region = 80  ;;  %s622_s22 = sand.u32 (!%p2529_p6), 1, %s2336_s19  }
  0x5e   : > { %s1825_s23 = sshll.u32 (!%p2529_p6), %s622_s22, 6  ;;  %s623_s30 = scalar_lea.sflag (!%p2529_p6), [#allocation4], %s622_s22 }
  0x5f   : > { %s2578_s16 = scalar_lea.vmem (!%p2529_p6), [#allocation3], %s1825_s23 }
  0x62   : > { %2315 = dma.done.wait (%p2485_p7), %s623_s30, 1024  }
  0x63   : > { %2317 = vsyncadd (%p2485_p7), %s623_s30, 4294966272  ;;  %s631_s17 = sand.u32 1, %s2472_s24   ;;  %s2585_s25 = scalar_lea.vmem [#allocation6], %s1825_s23 }
  0x64   : > { %s632_s18 = scalar_lea.sflag [#allocation7], %s631_s17 }
  0x65   : > { %2319 = dma.done.wait (%p2485_p7), %s632_s18, 2048  }
  0x66   : > { %2321 = vsyncadd (%p2485_p7), %s632_s18, 4294965248  ;;  %s2591_s0 = scalar_lea.vmem [#allocation8], %s1825_s23  ;;  %s650_s12 = scalar_lea.sflag [#allocation10], %s622_s22 }
  0x67   : > { %s2593_s20 = scalar_lea.vmem [#allocation9], %s1825_s23 }
  0x68   : > { %2323 = dma.done.wait (%p2485_p7), %s650_s12, 1024  }
  0x69   : > { %2325 = vsyncadd (%p2485_p7), %s650_s12, 4294966272  ;;  %p745_p9 = scmp.lt.s32.totalorder %s2344_s21, 1  ;;  %s2873_s14 = sld [smem:[#allocation25_spill]] }
  0x6a   : > { %s2874_s8 = sld [smem:[#allocation27_spill]]  ;;  %p1829_p7 = scmp.ne.s32.totalorder %s2344_s21, 0 }
  0x6b   : > { %s2601_s3 = scalar_select %p745_p9, %s2344_s21, 1 }
  0x6c   : > { %s2875_s29 = sld [smem:[#allocation29_spill]] }
  0x6d   : > { %s759_s18 = scalar_lea.vmem %s2831_s7, %s2601_s3  ;;  %s2876_s23 = sld [smem:[#allocation22_spill]] (!%p1829_p7) }
  0x6e   : > { %774 = sbr.rel (%p1829_p7) target bundleno = 119 (0x77), region = 100 }
  0x6f   : > { %s762_s27 = scalar_lea.vmem %s2873_s14, %s2601_s3 }
  0x70   : > { %s765_s28 = scalar_lea.vmem %s2874_s8, %s2601_s3 }
  0x72   : > { %s768_s10 = scalar_lea.vmem %s2875_s29, %s2601_s3 }
  0x73   : > { %s2877_s15 = smov %s2876_s23  ;;  %v775_v0 = vld [vmem:[%s2876_s23] sm:$0xff] }
  0x74   : > { %v776_v1 = vld [vmem:[%s2877_s15 + $0x8] sm:$0xff]  ;;  %v777_v2 = vld [vmem:[%s2877_s15 + $0x10] sm:$0xff]  ;;  %779 = vst [vmem:[#allocation2 + $0x10] sm:$0xff] %v775_v0  ;;  %v778_v3 = vld [vmem:[%s2877_s15 + $0x18] sm:$0xff] }
  0x75   : > { %780 = vst [vmem:[#allocation2] sm:$0xff] %v776_v1  ;;  %781 = vst [vmem:[#allocation2 + $0x18] sm:$0xff] %v777_v2 }
  0x76   : > { %782 = vst [vmem:[#allocation2 + $0x8] sm:$0xff] %v778_v3 }
  0x77 PF: > { %v787_v8 = vlaneseq  ;;  %v2082_v30 = vld [vmem:[%s2578_s16 + $0x38] sm:$0xff]   ;;  %v2083_v31 = vld [vmem:[%s2578_s16 + $0x30] sm:$0xff]   ;;  %v2084_v32 = vld [vmem:[%s2578_s16 + $0x28] sm:$0xff]   ;;  %s2878_s13 = scalar_lea.vmem %s2825_s1, %s2601_s3  ;;  %s2879_s8 = scalar_lea.vmem %s2826_s2, %s2601_s3 }
  0x78   : > { %1921 = vmatprep.subr.bf16.mxu0 %v2082_v30  ;;  %v2085_v33 = vld [vmem:[%s2578_s16 + $0x20] sm:$0xff]   ;;  %v2086_v34 = vld [vmem:[%s2578_s16 + $0x18] sm:$0xff]   ;;  %v2087_v35 = vld [vmem:[%s2578_s16 + $0x10] sm:$0xff]   ;;  %s2880_s22 = scalar_lea.vmem %s2828_s4, %s2601_s3  ;;  %s2881_s17 = scalar_lea.vmem %s2830_s6, %s2601_s3 }
  0x79   : > { %v2660_v9 = vand.u32 127, %v787_v8  ;;  %1922 = vmatpush3.bf16.msra.mxu0 %v2082_v30  ;;  %v2088_v36 = vld [vmem:[%s2578_s16 + $0x8] sm:$0xff]   ;;  %v2089_v37 = vld [vmem:[%s2578_s16] sm:$0xff]   ;;  %p1870_p11 = scmp.ne.s32.totalorder %s2344_s21, 1 }
  0x7a   : > { %1923 = vmatprep.subr.bf16.mxu0 %v2083_v31  ;;  %v1830_v52 = vld [vmem:[%s2878_s13] ss:$0 sm:$0xff]  ;;  %s2886_s14 = sld [smem:[#allocation31_spill]] (!%p1870_p11) }
  0x7b   : > { %v2648_v4 = vld [vmem:[#allocation2 + $0x10] sm:$0xff]  ;;  %vm789_vm0 = vcmp.lt.s32.totalorder %v2660_v9, 32  ;;  %v1831_v57 = vld [vmem:[%s2879_s8] ss:$0 sm:$0xff] }
  0x7c   : > { %v2650_v5 = vld [vmem:[#allocation2 + $0x18] sm:$0xff]  ;;  %v2652_v6 = vld [vmem:[#allocation2] sm:$0xff]  ;;  %792 = vadd.xlane.f32.xlu0 %v2648_v4 }
  0x7d   : > { %796 = vadd.xlane.f32.xlu1 %v2650_v5  ;;  %v2656_v7 = vld [vmem:[#allocation2 + $0x8] sm:$0xff]  ;;  %1924 = vmatpush3.bf16.msra.mxu0 %v2083_v31 }
  0x7e   : > { %1925 = vmatprep.subr.bf16.mxu0 %v2084_v32 }
  0x80   : > { %794 = vadd.xlane.f32.xlu0 %v2652_v6 }
  0x81   : > { %798 = vadd.xlane.f32.xlu1 %v2656_v7  ;;  %1926 = vmatpush3.bf16.msra.mxu0 %v2084_v32 }
  0x82   : > { %1927 = vmatprep.subr.bf16.mxu0 %v2085_v33 }
  0x85   : > { %1928 = vmatpush3.bf16.msra.mxu0 %v2085_v33 }
  0x86   : > { %1929 = vmatprep.subr.bf16.mxu0 %v2086_v34 }
  0x89   : > { %1930 = vmatpush3.bf16.msra.mxu0 %v2086_v34 }
  0x8a   : > { %1931 = vmatprep.subr.bf16.mxu0 %v2087_v35 }
  0x8d   : > { %1932 = vmatpush3.bf16.msra.mxu0 %v2087_v35 }
  0x8e   : > { %1933 = vmatprep.subr.bf16.mxu0 %v2088_v36 }
  0x91   : > { %1934 = vmatpush3.bf16.msra.mxu0 %v2088_v36 }
  0x92   : > { %1935 = vmatprep.subr.bf16.mxu0 %v2089_v37 }
  0x95   : > { %1936 = vmatpush3.bf16.msra.mxu0 %v2089_v37 }
 0x105   : > { %v793_v10 = vpop.xlane.xlu0 %792 }
 0x106   : > { %v797_v11 = vpop.xlane.xlu1 %796  ;;  %v800_v12 = vmul.f32 0.03125, %v793_v10 }
 0x107   : > { %v802_v13 = vmul.f32 0.03125, %v797_v11  ;;  %v2090_v11 = vld [vmem:[%s2585_s25 + $0x38] sm:$0xff]  }
 0x108   : > { %v804_v14 = vsub.f32 %v2648_v4, %v800_v12  ;;  %1941 = vmatprep.subr.bf16.mxu1 %v2090_v11  ;;  %v2091_v12 = vld [vmem:[%s2585_s25 + $0x30] sm:$0xff]  }
 0x109   : > { %v806_v15 = vsub.f32 %v2650_v5, %v802_v13  ;;  %v795_v16 = vpop.xlane.xlu0 %794  ;;  %1942 = vmatpush3.bf16.msra.mxu1 %v2090_v11  ;;  %v2092_v13 = vld [vmem:[%s2585_s25 + $0x28] sm:$0xff]  }
 0x10a   : > { %v799_v17 = vpop.xlane.xlu1 %798  ;;  %v801_v18 = vmul.f32 0.03125, %v795_v16  ;;  %v810_v20 = vsel %vm789_vm0, %v804_v14, 0.0  ;;  %1943 = vmatprep.subr.bf16.mxu1 %v2091_v12  ;;  %v2093_v14 = vld [vmem:[%s2585_s25 + $0x20] sm:$0xff]   ;;  %v2095_v16 = vld [vmem:[%s2585_s25 + $0x10] sm:$0xff]  }
 0x10b   : > { %v803_v19 = vmul.f32 0.03125, %v799_v17  ;;  %v812_v21 = vsel %vm789_vm0, %v806_v15, 0.0  ;;  %v814_v22 = vmul.f32 %v810_v20, %v810_v20  ;;  %v2094_v15 = vld [vmem:[%s2585_s25 + $0x18] sm:$0xff]   ;;  %v2096_v17 = vld [vmem:[%s2585_s25 + $0x8] sm:$0xff]  }
 0x10c   : > { %v805_v23 = vsub.f32 %v2652_v6, %v801_v18  ;;  %v816_v25 = vmul.f32 %v812_v21, %v812_v21  ;;  %v2097_v18 = vld [vmem:[%s2585_s25] sm:$0xff]  }
 0x10d   : > { %v807_v24 = vsub.f32 %v2656_v7, %v803_v19  ;;  %818 = vadd.xlane.f32.xlu0 %v814_v22  ;;  %1944 = vmatpush3.bf16.msra.mxu1 %v2091_v12  ;;  %v1832_v19 = vld [vmem:[%s2880_s22] ss:$0 sm:$0xff] }
 0x10e   : > { %v811_v26 = vsel %vm789_vm0, %v805_v23, 0.0  ;;  %1945 = vmatprep.subr.bf16.mxu1 %v2092_v13 }
 0x10f   : > { %v813_v27 = vsel %vm789_vm0, %v807_v24, 0.0  ;;  %v815_v28 = vmul.f32 %v811_v26, %v811_v26 }
 0x110   : > { %v817_v29 = vmul.f32 %v813_v27, %v813_v27 }
 0x111   : > { %822 = vadd.xlane.f32.xlu0 %v816_v25  ;;  %820 = vadd.xlane.f32.xlu1 %v815_v28 }
 0x112   : > { %1946 = vmatpush3.bf16.msra.mxu1 %v2092_v13 }
 0x113   : > { %1947 = vmatprep.subr.bf16.mxu1 %v2093_v14 }
 0x115   : > { %824 = vadd.xlane.f32.xlu1 %v817_v29 }
 0x116   : > { %1948 = vmatpush3.bf16.msra.mxu1 %v2093_v14 }
 0x117   : > { %1949 = vmatprep.subr.bf16.mxu1 %v2094_v15 }
 0x11a   : > { %1950 = vmatpush3.bf16.msra.mxu1 %v2094_v15 }
 0x11b   : > { %1951 = vmatprep.subr.bf16.mxu1 %v2095_v16 }
 0x11e   : > { %1952 = vmatpush3.bf16.msra.mxu1 %v2095_v16 }
 0x11f   : > { %1953 = vmatprep.subr.bf16.mxu1 %v2096_v17 }
 0x122   : > { %1954 = vmatpush3.bf16.msra.mxu1 %v2096_v17 }
 0x123   : > { %1955 = vmatprep.subr.bf16.mxu1 %v2097_v18 }
 0x126   : > { %1956 = vmatpush3.bf16.msra.mxu1 %v2097_v18 }
 0x196   : > { %v819_v38 = vpop.xlane.xlu0 %818 }
 0x197   : > { %v826_v39 = vmul.f32 0.03125, %v819_v38 }
 0x199   : > { %v830_v40 = vadd.f32 1e-05, %v826_v39 }
 0x19a   : > { %v821_v41 = vpop.xlane.xlu1 %820  ;;  %v823_v42 = vpop.xlane.xlu0 %822 }
 0x19b   : > { %2114 = vrsqrt.f32 %v830_v40  ;;  %v827_v43 = vmul.f32 0.03125, %v821_v41  ;;  %v828_v44 = vmul.f32 0.03125, %v823_v42 }
 0x19d   : > { %v831_v45 = vadd.f32 1e-05, %v827_v43  ;;  %v832_v46 = vadd.f32 1e-05, %v828_v44 }
 0x19e   : > { %v825_v47 = vpop.xlane.xlu1 %824 }
 0x19f   : > { %2116 = vrsqrt.f32 %v831_v45  ;;  %v829_v48 = vmul.f32 0.03125, %v825_v47 }
 0x1a0   : > { %2118 = vrsqrt.f32 %v832_v46 }
 0x1a1   : > { %v833_v49 = vadd.f32 1e-05, %v829_v48 }
 0x1a3   : > { %2120 = vrsqrt.f32 %v833_v49 }
 0x1a8   : > { %v2115_v50 = vpop.eup %2114 }
 0x1a9   : > { %v838_v51 = vmul.f32 %v2115_v50, %v810_v20 }
 0x1ab   : > { %v848_v56 = vmul.f32 %v1830_v52, %v838_v51 }
 0x1ac   : > { %v2117_v53 = vpop.eup %2116 }
 0x1ad   : > { %v2119_v54 = vpop.eup %2118  ;;  %v839_v55 = vmul.f32 %v2117_v53, %v811_v26  ;;  %v858_v61 = vadd.f32 %v1831_v57, %v848_v56 }
 0x1ae   : > { %v840_v58 = vmul.f32 %v2119_v54, %v812_v21 }
 0x1af   : > { %v849_v59 = vmul.f32 %v1830_v52, %v839_v55 }
 0x1b0   : > { %v2121_v60 = vpop.eup %2120  ;;  %v850_v0 = vmul.f32 %v1830_v52, %v840_v58 }
 0x1b1   : > { %v859_v62 = vadd.f32 %v1831_v57, %v849_v59  ;;  %v841_v63 = vmul.f32 %v2121_v60, %v813_v27 }
 0x1b2   : > { %v860_v3 = vadd.f32 %v1831_v57, %v850_v0 }
 0x1b3   : > { %v894_v1 = vpack.c.bf16 %v859_v62, %v858_v61  ;;  %v851_v2 = vmul.f32 %v1830_v52, %v841_v63 }
 0x1b5   : > { %1937 = vmatprep.mubr.bf16.mxu0 %v894_v1  ;;  %v861_v8 = vadd.f32 %v1831_v57, %v851_v2 }
 0x1b7   : > { %v895_v10 = vpack.c.bf16 %v861_v8, %v860_v3  ;;  %v1841_v3 = vld [vmem:[%s2881_s17] ss:$0 sm:$0xff] }
 0x1b9   : > { %1938 = vmatmul.mubr.bf16.vlgmr.msra.gmra.mxu0 %v895_v10 }
 0x279   : > { %v1939_v20 = vpop.f32.mrf.mxu0 }
 0x27a   : > { %v994_v21 = vadd.f32 %v1939_v20, %v1832_v19 }
 0x27b   : > { %v985_v22 = vpop.f32.mrf.mxu0 }
 0x27c   : > { %v1006_v23 = vmul.f32 0.044715, %v994_v21  ;;  %v986_v24 = vadd.f32 %v1832_v19, %v985_v22  ;;  %v1002_v59 = vmul.f32 0.5, %v994_v21 }
 0x27d   : > { %v1940_v25 = vpop.f32.mrf.mxu0 }
 0x27e   : > { %v1010_v26 = vmul.f32 %v1006_v23, %v994_v21  ;;  %v1004_v27 = vmul.f32 0.044715, %v986_v24  ;;  %v997_v28 = vadd.f32 %v1940_v25, %v1832_v19  ;;  %v1000_v56 = vmul.f32 0.5, %v986_v24 }
 0x27f   : > { %v988_v29 = vpop.f32.mrf.mxu0 }
 0x280   : > { %v1014_v30 = vmul.f32 %v1010_v26, %v994_v21  ;;  %v1007_v31 = vmul.f32 0.044715, %v997_v28  ;;  %v989_v32 = vadd.f32 %v1832_v19, %v988_v29  ;;  %v1008_v33 = vmul.f32 %v1004_v27, %v986_v24 }
 0x281   : > { %v1003_v54 = vmul.f32 0.5, %v997_v28 }
 0x282   : > { %v1011_v34 = vmul.f32 %v1007_v31, %v997_v28  ;;  %v1005_v35 = vmul.f32 0.044715, %v989_v32  ;;  %v1012_v36 = vmul.f32 %v1008_v33, %v986_v24  ;;  %v1018_v37 = vadd.f32 %v1014_v30, %v994_v21 }
 0x283   : > { %v1001_v57 = vmul.f32 0.5, %v989_v32 }
 0x284   : > { %v1015_v38 = vmul.f32 %v1011_v34, %v997_v28  ;;  %v1009_v39 = vmul.f32 %v1005_v35, %v989_v32  ;;  %v1016_v40 = vadd.f32 %v1012_v36, %v986_v24  ;;  %v1022_v41 = vmul.f32 0.7978846, %v1018_v37  ;;  %v2098_v36 = vld [vmem:[%s2591_s0 + $0x38] sm:$0xff]   ;;  %v2099_v37 = vld [vmem:[%s2591_s0 + $0x30] sm:$0xff]  }
 0x285   : > { %1961 = vmatprep.subr.bf16.mxu0 %v2098_v36 }
 0x286   : > { %v1013_v42 = vmul.f32 %v1009_v39, %v989_v32  ;;  %v1020_v43 = vmul.f32 0.7978846, %v1016_v40  ;;  %v1019_v44 = vadd.f32 %v1015_v38, %v997_v28  ;;  %1962 = vmatpush3.bf16.msra.mxu0 %v2098_v36  ;;  %v2100_v38 = vld [vmem:[%s2591_s0 + $0x28] sm:$0xff]   ;;  %v2101_v39 = vld [vmem:[%s2591_s0 + $0x20] sm:$0xff]   ;;  %v2102_v40 = vld [vmem:[%s2591_s0 + $0x18] sm:$0xff]  }
 0x287   : > { %1963 = vmatprep.subr.bf16.mxu0 %v2099_v37 }
 0x288   : > { %v1017_v45 = vadd.f32 %v1013_v42, %v989_v32  ;;  %2122 = vtanh.f32 %v1020_v43  ;;  %v1023_v46 = vmul.f32 0.7978846, %v1019_v44  ;;  %v2104_v42 = vld [vmem:[%s2591_s0 + $0x8] sm:$0xff]   ;;  %v2105_v43 = vld [vmem:[%s2591_s0] sm:$0xff]  }
 0x289   : > { %2124 = vtanh.f32 %v1022_v41  ;;  %v2103_v41 = vld [vmem:[%s2591_s0 + $0x10] sm:$0xff]  }
 0x28a   : > { %v1021_v47 = vmul.f32 0.7978846, %v1017_v45  ;;  %2126 = vtanh.f32 %v1023_v46  ;;  %1964 = vmatpush3.bf16.msra.mxu0 %v2099_v37 }
 0x28b   : > { %1965 = vmatprep.subr.bf16.mxu0 %v2100_v38 }
 0x28c   : > { %2128 = vtanh.f32 %v1021_v47 }
 0x28e   : > { %1966 = vmatpush3.bf16.msra.mxu0 %v2100_v38 }
 0x28f   : > { %1967 = vmatprep.subr.bf16.mxu0 %v2101_v39 }
 0x292   : > { %1968 = vmatpush3.bf16.msra.mxu0 %v2101_v39 }
 0x293   : > { %1969 = vmatprep.subr.bf16.mxu0 %v2102_v40 }
 0x295   : > { %v2123_v48 = vpop.eup %2122 }
 0x296   : > { %v2125_v49 = vpop.eup %2124  ;;  %v1028_v51 = vadd.f32 1.0, %v2123_v48  ;;  %1970 = vmatpush3.bf16.msra.mxu0 %v2102_v40 }
 0x297   : > { %v2127_v50 = vpop.eup %2126  ;;  %v1030_v55 = vadd.f32 1.0, %v2125_v49  ;;  %1971 = vmatprep.subr.bf16.mxu0 %v2103_v41 }
 0x298   : > { %v1031_v52 = vadd.f32 1.0, %v2127_v50  ;;  %v1032_v61 = vmul.f32 %v1028_v51, %v1000_v56 }
 0x299   : > { %v2129_v53 = vpop.eup %2128  ;;  %v1034_v63 = vmul.f32 %v1030_v55, %v1002_v59 }
 0x29a   : > { %v1029_v58 = vadd.f32 1.0, %v2129_v53  ;;  %v1035_v60 = vmul.f32 %v1031_v52, %v1003_v54  ;;  %1972 = vmatpush3.bf16.msra.mxu0 %v2103_v41 }
 0x29b   : > { %1973 = vmatprep.subr.bf16.mxu0 %v2104_v42 }
 0x29c   : > { %v1033_v62 = vmul.f32 %v1029_v58, %v1001_v57  ;;  %v1037_v1 = vpack.c.bf16 %v1035_v60, %v1034_v63  ;;  %v1850_v58 = vld [vmem:[%s759_s18] ss:$0 sm:$0xff] }
 0x29d   : > { %v1851_v63 = vld [vmem:[%s762_s27] ss:$0 sm:$0xff] }
 0x29e   : > { %v1036_v0 = vpack.c.bf16 %v1033_v62, %v1032_v61  ;;  %1974 = vmatpush3.bf16.msra.mxu0 %v2104_v42 }
 0x29f   : > { %1975 = vmatprep.subr.bf16.mxu0 %v2105_v43 }
 0x2a0   : > { %1957 = vmatprep.mubr.bf16.mxu1 %v1036_v0 }
 0x2a1   : > { %1958 = vmatmul.mubr.bf16.vlgmr.msra.gmra.mxu1 %v1037_v1 }
 0x2a2   : > { %1976 = vmatpush3.bf16.msra.mxu0 %v2105_v43 }
 0x361   : > { %v1959_v2 = vpop.f32.mrf.mxu1 }
 0x362   : > { %v1136_v12 = vadd.f32 %v1959_v2, %v1841_v3 }
 0x363   : > { %v1127_v8 = vpop.f32.mrf.mxu1 }
 0x364   : > { %v1128_v10 = vadd.f32 %v1841_v3, %v1127_v8  ;;  %v2716_v16 = vadd.f32 %v1136_v12, %v2650_v5 }
 0x365   : > { %v1960_v11 = vpop.f32.mrf.mxu1 }
 0x366   : > { %v2712_v13 = vadd.f32 %v1128_v10, %v2648_v4  ;;  %v1139_v17 = vadd.f32 %v1960_v11, %v1841_v3 }
 0x367   : > { %v1130_v14 = vpop.f32.mrf.mxu1 }
 0x368   : > { %v1131_v15 = vadd.f32 %v1841_v3, %v1130_v14  ;;  %1148 = vadd.xlane.f32.xlu0 %v2712_v13  ;;  %v2724_v19 = vadd.f32 %v1139_v17, %v2656_v7 }
 0x36a   : > { %v2719_v18 = vadd.f32 %v1131_v15, %v2652_v6 }
 0x36c   : > { %1150 = vadd.xlane.f32.xlu1 %v2719_v18  ;;  %1152 = vadd.xlane.f32.xlu0 %v2716_v16 }
 0x370   : > { %1154 = vadd.xlane.f32.xlu1 %v2724_v19 }
 0x3f1   : > { %v1149_v4 = vpop.xlane.xlu0 %1148 }
 0x3f2   : > { %v1156_v20 = vmul.f32 0.03125, %v1149_v4 }
 0x3f4   : > { %v1160_v21 = vsub.f32 %v2712_v13, %v1156_v20  ;;  %v2106_v20 = vld [vmem:[%s2593_s20 + $0x38] sm:$0xff]  }
 0x3f5   : > { %v1151_v22 = vpop.xlane.xlu1 %1150  ;;  %v1153_v5 = vpop.xlane.xlu0 %1152  ;;  %1981 = vmatprep.subr.bf16.mxu1 %v2106_v20 }
 0x3f6   : > { %v1157_v23 = vmul.f32 0.03125, %v1151_v22  ;;  %v1158_v24 = vmul.f32 0.03125, %v1153_v5  ;;  %v1164_v6 = vsel %vm789_vm0, %v1160_v21, 0.0  ;;  %1982 = vmatpush3.bf16.msra.mxu1 %v2106_v20  ;;  %v2107_v21 = vld [vmem:[%s2593_s20 + $0x30] sm:$0xff]   ;;  %v2108_v22 = vld [vmem:[%s2593_s20 + $0x28] sm:$0xff]   ;;  %v2109_v5 = vld [vmem:[%s2593_s20 + $0x20] sm:$0xff]  }
 0x3f7   : > { %v1168_v25 = vmul.f32 %v1164_v6, %v1164_v6  ;;  %1983 = vmatprep.subr.bf16.mxu1 %v2107_v21 }
 0x3f8   : > { %v1161_v26 = vsub.f32 %v2719_v18, %v1157_v23  ;;  %v1162_v7 = vsub.f32 %v2716_v16, %v1158_v24  ;;  %v2110_v23 = vld [vmem:[%s2593_s20 + $0x18] sm:$0xff]   ;;  %v2111_v24 = vld [vmem:[%s2593_s20 + $0x10] sm:$0xff]  }
 0x3f9   : > { %v1155_v27 = vpop.xlane.xlu1 %1154  ;;  %1172 = vadd.xlane.f32.xlu0 %v1168_v25  ;;  %v2113_v25 = vld [vmem:[%s2593_s20] sm:$0xff]  }
 0x3fa   : > { %v1159_v28 = vmul.f32 0.03125, %v1155_v27  ;;  %v1165_v29 = vsel %vm789_vm0, %v1161_v26, 0.0  ;;  %v1166_v30 = vsel %vm789_vm0, %v1162_v7, 0.0  ;;  %1984 = vmatpush3.bf16.msra.mxu1 %v2107_v21  ;;  %v1852_v26 = vld [vmem:[%s765_s28] ss:$0 sm:$0xff] }
 0x3fb   : > { %v1169_v31 = vmul.f32 %v1165_v29, %v1165_v29  ;;  %v1170_v32 = vmul.f32 %v1166_v30, %v1166_v30  ;;  %1985 = vmatprep.subr.bf16.mxu1 %v2108_v22 }
 0x3fc   : > { %v1163_v33 = vsub.f32 %v2724_v19, %v1159_v28 }
 0x3fd   : > { %1174 = vadd.xlane.f32.xlu1 %v1169_v31  ;;  %1176 = vadd.xlane.f32.xlu0 %v1170_v32 }
 0x3fe   : > { %v1167_v34 = vsel %vm789_vm0, %v1163_v33, 0.0  ;;  %1986 = vmatpush3.bf16.msra.mxu1 %v2108_v22 }
 0x3ff   : > { %v1171_v35 = vmul.f32 %v1167_v34, %v1167_v34  ;;  %1987 = vmatprep.subr.bf16.mxu1 %v2109_v5 }
 0x401   : > { %1178 = vadd.xlane.f32.xlu1 %v1171_v35 }
 0x402   : > { %1988 = vmatpush3.bf16.msra.mxu1 %v2109_v5 }
 0x403   : > { %1989 = vmatprep.subr.bf16.mxu1 %v2110_v23 }
 0x406   : > { %1990 = vmatpush3.bf16.msra.mxu1 %v2110_v23 }
 0x407   : > { %1991 = vmatprep.subr.bf16.mxu1 %v2111_v24 }
 0x40a   : > { %1992 = vmatpush3.bf16.msra.mxu1 %v2111_v24 }
 0x482   : > { %v1173_v44 = vpop.xlane.xlu0 %1172 }
 0x483   : > { %v1180_v45 = vmul.f32 0.03125, %v1173_v44 }
 0x485   : > { %v1184_v46 = vadd.f32 1e-05, %v1180_v45 }
 0x486   : > { %v1175_v47 = vpop.xlane.xlu1 %1174  ;;  %v1177_v48 = vpop.xlane.xlu0 %1176 }
 0x487   : > { %2130 = vrsqrt.f32 %v1184_v46  ;;  %v1181_v49 = vmul.f32 0.03125, %v1175_v47  ;;  %v1182_v50 = vmul.f32 0.03125, %v1177_v48 }
 0x489   : > { %v1185_v51 = vadd.f32 1e-05, %v1181_v49  ;;  %v1186_v52 = vadd.f32 1e-05, %v1182_v50 }
 0x48a   : > { %v1179_v53 = vpop.xlane.xlu1 %1178 }
 0x48b   : > { %2132 = vrsqrt.f32 %v1185_v51  ;;  %v1183_v54 = vmul.f32 0.03125, %v1179_v53 }
 0x48c   : > { %2134 = vrsqrt.f32 %v1186_v52 }
 0x48d   : > { %v1187_v55 = vadd.f32 1e-05, %v1183_v54 }
 0x48f   : > { %2136 = vrsqrt.f32 %v1187_v55 }
 0x494   : > { %v2131_v56 = vpop.eup %2130 }
 0x495   : > { %v1192_v57 = vmul.f32 %v2131_v56, %v1164_v6  ;;  %v2112_v6 = vld [vmem:[%s2593_s20 + $0x8] sm:$0xff]  }
 0x496   : > { %1993 = vmatprep.subr.bf16.mxu1 %v2112_v6 }
 0x497   : > { %v1202_v62 = vmul.f32 %v1850_v58, %v1192_v57  ;;  %1994 = vmatpush3.bf16.msra.mxu1 %v2112_v6 }
 0x498   : > { %v2133_v59 = vpop.eup %2132  ;;  %1995 = vmatprep.subr.bf16.mxu1 %v2113_v25 }
 0x499   : > { %v2135_v60 = vpop.eup %2134  ;;  %v1193_v61 = vmul.f32 %v2133_v59, %v1165_v29  ;;  %v1212_v3 = vadd.f32 %v1851_v63, %v1202_v62 }
 0x49a   : > { %v1194_v0 = vmul.f32 %v2135_v60, %v1166_v30 }
 0x49b   : > { %v1203_v1 = vmul.f32 %v1850_v58, %v1193_v61  ;;  %1996 = vmatpush3.bf16.msra.mxu1 %v2113_v25 }
 0x49c   : > { %v2137_v2 = vpop.eup %2136  ;;  %v1204_v11 = vmul.f32 %v1850_v58, %v1194_v0 }
 0x49d   : > { %v1213_v8 = vadd.f32 %v1851_v63, %v1203_v1  ;;  %v1195_v10 = vmul.f32 %v2137_v2, %v1167_v34 }
 0x49e   : > { %v1214_v15 = vadd.f32 %v1851_v63, %v1204_v11 }
 0x49f   : > { %v1248_v12 = vpack.c.bf16 %v1213_v8, %v1212_v3  ;;  %v1205_v14 = vmul.f32 %v1850_v58, %v1195_v10 }
 0x4a1   : > { %1977 = vmatprep.mubr.bf16.mxu0 %v1248_v12  ;;  %v1215_v17 = vadd.f32 %v1851_v63, %v1205_v14  ;;  %v1861_v14 = vld [vmem:[%s768_s10] ss:$0 sm:$0xff]  ;;  %s2885_s10 = sld [smem:[#allocation30_spill]] (!%p1870_p11) }
 0x4a3   : > { %v1249_v4 = vpack.c.bf16 %v1215_v17, %v1214_v15 }
 0x4a5   : > { %1978 = vmatmul.mubr.bf16.vlgmr.msra.gmra.mxu0 %v1249_v4 }
 0x565   : > { %v1979_v7 = vpop.f32.mrf.mxu0 }
 0x566   : > { %v1348_v27 = vadd.f32 %v1979_v7, %v1852_v26 }
 0x567   : > { %v1339_v28 = vpop.f32.mrf.mxu0 }
 0x568   : > { %v1360_v29 = vmul.f32 0.044715, %v1348_v27  ;;  %v1340_v30 = vadd.f32 %v1852_v26, %v1339_v28  ;;  %v1356_v1 = vmul.f32 0.5, %v1348_v27 }
 0x569   : > { %v1980_v31 = vpop.f32.mrf.mxu0 }
 0x56a   : > { %v1364_v32 = vmul.f32 %v1360_v29, %v1348_v27  ;;  %v1358_v33 = vmul.f32 0.044715, %v1340_v30  ;;  %v1351_v34 = vadd.f32 %v1980_v31, %v1852_v26  ;;  %v1354_v62 = vmul.f32 0.5, %v1340_v30 }
 0x56b   : > { %v1342_v35 = vpop.f32.mrf.mxu0 }
 0x56c   : > { %v1368_v36 = vmul.f32 %v1364_v32, %v1348_v27  ;;  %v1362_v37 = vmul.f32 %v1358_v33, %v1340_v30  ;;  %v1361_v38 = vmul.f32 0.044715, %v1351_v34  ;;  %v1343_v39 = vadd.f32 %v1852_v26, %v1342_v35 }
 0x56d   : > { %v1357_v60 = vmul.f32 0.5, %v1351_v34 }
 0x56e   : > { %v1372_v40 = vadd.f32 %v1368_v36, %v1348_v27  ;;  %v1366_v41 = vmul.f32 %v1362_v37, %v1340_v30  ;;  %v1365_v42 = vmul.f32 %v1361_v38, %v1351_v34  ;;  %v1359_v43 = vmul.f32 0.044715, %v1343_v39 }
 0x56f   : > { %v1355_v63 = vmul.f32 0.5, %v1343_v39 }
 0x570   : > { %v1369_v44 = vmul.f32 %v1365_v42, %v1351_v34  ;;  %v1363_v45 = vmul.f32 %v1359_v43, %v1343_v39  ;;  %v1370_v46 = vadd.f32 %v1366_v41, %v1340_v30  ;;  %v1376_v47 = vmul.f32 0.7978846, %v1372_v40 }
 0x572   : > { %v1373_v48 = vadd.f32 %v1369_v44, %v1351_v34  ;;  %v1367_v49 = vmul.f32 %v1363_v45, %v1343_v39  ;;  %v1374_v50 = vmul.f32 0.7978846, %v1370_v46 }
 0x574   : > { %v1377_v51 = vmul.f32 0.7978846, %v1373_v48  ;;  %v1371_v52 = vadd.f32 %v1367_v49, %v1343_v39  ;;  %2138 = vtanh.f32 %v1374_v50 }
 0x575   : > { %2140 = vtanh.f32 %v1376_v47 }
 0x576   : > { %2142 = vtanh.f32 %v1377_v51  ;;  %v1375_v53 = vmul.f32 0.7978846, %v1371_v52 }
 0x578   : > { %2144 = vtanh.f32 %v1375_v53 }
 0x581   : > { %v2139_v54 = vpop.eup %2138 }
 0x582   : > { %v2141_v55 = vpop.eup %2140  ;;  %v1382_v57 = vadd.f32 1.0, %v2139_v54 }
 0x583   : > { %v2143_v56 = vpop.eup %2142  ;;  %v1384_v61 = vadd.f32 1.0, %v2141_v55 }
 0x584   : > { %v1385_v58 = vadd.f32 1.0, %v2143_v56  ;;  %v1386_v3 = vmul.f32 %v1382_v57, %v1354_v62 }
 0x585   : > { %v2145_v59 = vpop.eup %2144  ;;  %v1388_v10 = vmul.f32 %v1384_v61, %v1356_v1 }
 0x586   : > { %v1383_v0 = vadd.f32 1.0, %v2145_v59  ;;  %v1389_v2 = vmul.f32 %v1385_v58, %v1357_v60 }
 0x588   : > { %v1387_v8 = vmul.f32 %v1383_v0, %v1355_v63  ;;  %v1391_v12 = vpack.c.bf16 %v1389_v2, %v1388_v10 }
 0x58a   : > { %v1390_v11 = vpack.c.bf16 %v1387_v8, %v1386_v3 }
 0x58c   : > { %1997 = vmatprep.mubr.bf16.mxu1 %v1390_v11 }
 0x58d   : > { %1998 = vmatmul.mubr.bf16.vlgmr.msra.gmra.mxu1 %v1391_v12 }
 0x64d   : > { %v1999_v15 = vpop.f32.mrf.mxu1 }
 0x64e   : > { %v1490_v17 = vadd.f32 %v1999_v15, %v1861_v14 }
 0x64f   : > { %v1481_v4 = vpop.f32.mrf.mxu1 }
 0x650   : > { %v1498_v20 = vadd.f32 %v1490_v17, %v2716_v16  ;;  %v1482_v21 = vadd.f32 %v1861_v14, %v1481_v4 }
 0x651   : > { %v2000_v22 = vpop.f32.mrf.mxu1 }
 0x652   : > { %1502 = vst [vmem:[#allocation2 + $0x18] sm:$0xff] %v1498_v20  ;;  %v1496_v5 = vadd.f32 %v1482_v21, %v2712_v13  ;;  %v1493_v23 = vadd.f32 %v2000_v22, %v1861_v14 }
 0x653   : > { %v1484_v24 = vpop.f32.mrf.mxu1 }
 0x654   : > { %1500 = vst [vmem:[#allocation2 + $0x10] sm:$0xff] %v1496_v5  ;;  %v1499_v6 = vadd.f32 %v1493_v23, %v2724_v19  ;;  %v1485_v25 = vadd.f32 %v1861_v14, %v1484_v24  ;;  %1507 = sbr.rel (%p1870_p11) target bundleno = 1941 (0x795), region = 104 }
 0x656   : > { %1503 = vst [vmem:[#allocation2 + $0x8] sm:$0xff] %v1499_v6  ;;  %v1497_v26 = vadd.f32 %v1485_v25, %v2719_v18 }
 0x658   : > { %1501 = vst [vmem:[#allocation2] sm:$0xff] %v1497_v26 }
 0x659   : > { %1510 = vadd.xlane.f32.xlu0 %v1496_v5  ;;  %1514 = vadd.xlane.f32.xlu1 %v1498_v20  ;;  %v1871_v54 = vld [vmem:[%s2885_s10] ss:$0 sm:$0xff] }
 0x65a   : > { %v1872_v56 = vld [vmem:[%s2886_s14] ss:$0 sm:$0xff] }
 0x65d   : > { %1512 = vadd.xlane.f32.xlu0 %v1497_v26  ;;  %1516 = vadd.xlane.f32.xlu1 %v1499_v6 }
 0x6e2   : > { %v1511_v16 = vpop.xlane.xlu0 %1510  ;;  %v1515_v7 = vpop.xlane.xlu1 %1514 }
 0x6e3   : > { %v1518_v13 = vmul.f32 0.03125, %v1511_v16  ;;  %v1520_v27 = vmul.f32 0.03125, %v1515_v7 }
 0x6e5   : > { %v1522_v28 = vsub.f32 %v1496_v5, %v1518_v13  ;;  %v1524_v29 = vsub.f32 %v1498_v20, %v1520_v27 }
 0x6e6   : > { %v1513_v30 = vpop.xlane.xlu0 %1512  ;;  %v1517_v19 = vpop.xlane.xlu1 %1516 }
 0x6e7   : > { %v1526_v31 = vsel %vm789_vm0, %v1522_v28, 0.0  ;;  %v1528_v18 = vsel %vm789_vm0, %v1524_v29, 0.0  ;;  %v1519_v32 = vmul.f32 0.03125, %v1513_v30  ;;  %v1521_v33 = vmul.f32 0.03125, %v1517_v19 }
 0x6e8   : > { %v1530_v34 = vmul.f32 %v1526_v31, %v1526_v31  ;;  %v1532_v37 = vmul.f32 %v1528_v18, %v1528_v18 }
 0x6e9   : > { %v1523_v35 = vsub.f32 %v1497_v26, %v1519_v32  ;;  %v1525_v36 = vsub.f32 %v1499_v6, %v1521_v33 }
 0x6ea   : > { %1534 = vadd.xlane.f32.xlu0 %v1530_v34 }
 0x6eb   : > { %v1527_v38 = vsel %vm789_vm0, %v1523_v35, 0.0  ;;  %v1529_v39 = vsel %vm789_vm0, %v1525_v36, 0.0 }
 0x6ec   : > { %v1531_v40 = vmul.f32 %v1527_v38, %v1527_v38  ;;  %v1533_v41 = vmul.f32 %v1529_v39, %v1529_v39 }
 0x6ee   : > { %1538 = vadd.xlane.f32.xlu0 %v1532_v37  ;;  %1536 = vadd.xlane.f32.xlu1 %v1531_v40 }
 0x6f2   : > { %1540 = vadd.xlane.f32.xlu1 %v1533_v41 }
 0x773   : > { %v1535_v42 = vpop.xlane.xlu0 %1534 }
 0x774   : > { %v1542_v43 = vmul.f32 0.03125, %v1535_v42 }
 0x776   : > { %v1546_v44 = vadd.f32 1e-05, %v1542_v43 }
 0x777   : > { %v1537_v45 = vpop.xlane.xlu1 %1536  ;;  %v1539_v46 = vpop.xlane.xlu0 %1538 }
 0x778   : > { %2146 = vrsqrt.f32 %v1546_v44  ;;  %v1543_v47 = vmul.f32 0.03125, %v1537_v45  ;;  %v1544_v48 = vmul.f32 0.03125, %v1539_v46 }
 0x77a   : > { %v1547_v49 = vadd.f32 1e-05, %v1543_v47  ;;  %v1548_v50 = vadd.f32 1e-05, %v1544_v48 }
 0x77b   : > { %v1541_v51 = vpop.xlane.xlu1 %1540 }
 0x77c   : > { %2148 = vrsqrt.f32 %v1547_v49  ;;  %v1545_v52 = vmul.f32 0.03125, %v1541_v51 }
 0x77d   : > { %2150 = vrsqrt.f32 %v1548_v50 }
 0x77e   : > { %v1549_v9 = vadd.f32 1e-05, %v1545_v52 }
 0x780   : > { %2152 = vrsqrt.f32 %v1549_v9 }
 0x785   : > { %v2147_v53 = vpop.eup %2146 }
 0x786   : > { %v1554_v55 = vmul.f32 %v2147_v53, %v1526_v31 }
 0x788   : > { %v1564_v57 = vmul.f32 %v1871_v54, %v1554_v55 }
 0x789   : > { %v2149_v58 = vpop.eup %2148 }
 0x78a   : > { %v2151_v59 = vpop.eup %2150  ;;  %v1574_v60 = vadd.f32 %v1872_v56, %v1564_v57  ;;  %v1555_v61 = vmul.f32 %v2149_v58, %v1527_v38 }
 0x78b   : > { %v1556_v62 = vmul.f32 %v2151_v59, %v1528_v18 }
 0x78c   : > { %1578 = vst [vmem:[#allocation11] sm:$0xff] %v1574_v60  ;;  %v1565_v63 = vmul.f32 %v1871_v54, %v1555_v61 }
 0x78d   : > { %v2153_v0 = vpop.eup %2152  ;;  %v1566_v1 = vmul.f32 %v1871_v54, %v1556_v62 }
 0x78e   : > { %v1575_v2 = vadd.f32 %v1872_v56, %v1565_v63  ;;  %v1557_v3 = vmul.f32 %v2153_v0, %v1529_v39 }
 0x78f   : > { %v1576_v8 = vadd.f32 %v1872_v56, %v1566_v1 }
 0x790   : > { %1579 = vst [vmem:[#allocation11 + $0x8] sm:$0xff] %v1575_v2  ;;  %v1567_v10 = vmul.f32 %v1871_v54, %v1557_v3 }
 0x791   : > { %1580 = vst [vmem:[#allocation11 + $0x10] sm:$0xff] %v1576_v8 }
 0x792   : > { %v1577_v11 = vadd.f32 %v1872_v56, %v1567_v10 }
 0x794   : > { %1581 = vst [vmem:[#allocation11 + $0x18] sm:$0xff] %v1577_v11 }
 0x795 PF: > { %p2027_p6 = scmp.eq.s32.totalorder %s2472_s24, 1  ;;  %s2360_s8 = smov [#allocation11]  }
 0x796   : > { %s1591_s29 = sshll.u32 %s2360_s8, 4  ;;  %s1592_s29 = int_to_ptr.vmem [resolvable:$true] %s1591_s29 }
 0x797   : > { %s2266_s26 = scalar_lea.vmem %s1592_s29, 512  ;;  %p2273_p0 = scmp.lt.s32.totalorder %s1592_s29, %s1592_s29 }
 0x798   : > { %p2267_p12 = scmp.ne.s32.totalorder %s1592_s29, %s2266_s26  ;;  %p2274_p1 = scmp.lt.s32.totalorder %s2266_s26, %s2266_s26 }
 0x79a   : > { %p2268_p13 = pnand %p2267_p12, %p2027_p6  ;;  %p2275_p2 = por %p2274_p1, %p2273_p0 }
 0x79c   : > { %p2269_p10 = pneg %p2268_p13 }
 0x79e   : > { %p2276_p3 = pnand %p2275_p2, %p2269_p10 }
 0x7a0   : > { %2279 = shalt.err (!%p2276_p3)
}
 0x7a1   : > { %s2361_s22 = smov 128   ;;  %s2362_s25 = smov 8  }
 0x7a2   : > { %s2887_s0 = sld [smem:[#allocation32_spill]] }
 0x7a8   : > { %2010 = dma.vmem_to_hbm [thread:$0]  (%p2027_p6), %s1592_s29, 512, %s2887_s0, [#allocation5], %s2361_s22, %s2361_s22, %s2362_s25  }
 0x7a9   : > { %2327 = dma.done.wait (%p2027_p6), [#allocation5], 512  }
 0x7aa   : > { %2329 = vsyncadd (%p2027_p6), [#allocation5], 4294966784 }
 0x7ab PF: > { %s2888_s12 = sld [smem:[#allocation19_spill]] }
 0x7ac   : > { %s2889_s18 = sld [smem:[#allocation16_spill]] }
 0x7ad   : > { %s2890_s19 = sld [smem:[#allocation17_spill]] }
 0x7ae   : > { %s2891_s20 = sld [smem:[#allocation21_spill]] }
 0x7af   : > { %s2892_s21 = sld [smem:[#allocation18_spill]] }
 0x7b0   : > { %s2893_s22 = sld [smem:[#allocation20_spill]] }
 0x7b1   : > { %s35_s23 = sadd.s32 1, %s2888_s12  }
 0x7b2   : > { %p32_p4 = scmp.ge.s32.totalorder %s35_s23, 4  }
 0x7b4   :  { %34 = sbr.rel (!%p32_p4) target bundleno = 21 (0x15), region = 190 }
 0x7b9   :  { %1607 = vsyncpa [#allocation4], 1 }
 0x7ba   :  { %1609 = vsyncpa [#allocation4 + $0x1], 1 }
 0x7bb   :  { %1610 = vsyncpa [#allocation7], 1 }
 0x7bc   :  { %1612 = vsyncpa [#allocation7 + $0x1], 1 }
 0x7bd   :  { %1613 = vsyncpa [#allocation10], 1 }
 0x7be   :  { %1615 = vsyncpa [#allocation10 + $0x1], 1 }
 0x7bf   :  { %1616 = vsyncpa [#allocation5], 1 }
 0x7c0   :  { %1618 = vsyncpa [#allocation5 + $0x1], 1 }

</bundles_post_ra>
